<compile_context>
chip_gen: v7x
topology: tpu7x:2x2x1
jax: 0.10.0
libtpu: 0.0.40
codegen_flags: <defaults>
</compile_context>

<pallas_src>
import functools

import jax
import jax.numpy as jnp
from jax.experimental import pallas as pl
from jax.experimental.pallas import tpu as pltpu

EPS = 1e-5                      # BatchNorm2d default eps
LEAKY_SLOPE = 0.2               # nn.LeakyReLU(0.2)
LANE = 128                      # TPU lane width
TM_MAX = 512                    # max rows per M-tile
VMEM_LIMIT = 32 * 1024 * 1024   # scoped VMEM budget (safe on v5e/v6e/v7x)


# ----------------------------------------------------------------------------
# Pallas kernels
# ----------------------------------------------------------------------------
def _matmul_act_kernel(p_ref, w_ref, o_ref, *, act, slope):
    # p_ref: (TM, K) bf16 patches, w_ref: (K, Cp) bf16, o_ref: (TM, Cp) f32
    acc = jnp.dot(p_ref[...], w_ref[...], preferred_element_type=jnp.float32)
    if act == "lrelu":
        o_ref[...] = jnp.where(acc >= 0, acc, slope * acc)
    elif act == "sigmoid":
        o_ref[...] = 1.0 / (1.0 + jnp.exp(-acc))
    else:
        o_ref[...] = acc


def _matmul_stats_kernel(p_ref, w_ref, raw_ref, sum_ref, ssq_ref):
    # Pass 1 of Conv+BN: tiled matmul; accumulate per-channel sum / sum-of-
    # squares in resident (1, Cp) output blocks across the M grid axis.
    @pl.when(pl.program_id(0) == 0)
    def _init():
        sum_ref[...] = jnp.zeros_like(sum_ref)
        ssq_ref[...] = jnp.zeros_like(ssq_ref)

    acc = jnp.dot(p_ref[...], w_ref[...], preferred_element_type=jnp.float32)
    raw_ref[...] = acc
    sum_ref[...] += jnp.sum(acc, axis=0, keepdims=True)
    ssq_ref[...] += jnp.sum(acc * acc, axis=0, keepdims=True)


def _bn_lrelu_kernel(raw_ref, sum_ref, ssq_ref, g_ref, b_ref, o_ref, *,
                     slope, eps, inv_count):
    # Pass 2 of Conv+BN: normalize with batch stats (biased variance) + LReLU.
    acc = raw_ref[...]
    mean = sum_ref[...] * inv_count
    var = jnp.maximum(ssq_ref[...] * inv_count - mean * mean, 0.0)
    y = (acc - mean) * jax.lax.rsqrt(var + eps)
    y = y * g_ref[...] + b_ref[...]
    o_ref[...] = jnp.where(y >= 0, y, slope * y)


# ----------------------------------------------------------------------------
# Glue: padding, im2col, operand prep (M padding, lane padding, bf16 cast)
# ----------------------------------------------------------------------------
def _round_up(x, m):
    return ((x + m - 1) // m) * m


def _pad_nhwc(x, pad):
    if pad > 0:
        x = jnp.pad(x, ((0, 0), (pad, pad), (pad, pad), (0, 0)))
    return x


def _im2col(xp, k, stride):
    # xp: (N, Hp, Wp, C) -> (N*Ho*Wo, k*k*C); patch channel order (ki, kj, ci)
    n, hp, wp, c = xp.shape
    ho = (hp - k) // stride + 1
    wo = (wp - k) // stride + 1
    cols = []
    for ki in range(k):
        for kj in range(k):
            cols.append(xp[:, ki:ki + stride * ho:stride,
                           kj:kj + stride * wo:stride, :])
    patches = jnp.concatenate(cols, axis=-1)
    return patches.reshape(n * ho * wo, k * k * c), ho, wo


def _prep_operands(patches, w_mat):
    # Pad M to a tile multiple (zero rows: exact for the BN stats since zeros
    # contribute nothing and we divide by the real count), pad Cout to 128
    # lanes (unmasked stores), cast matmul operands to bf16.
    m, _ = patches.shape
    cout = w_mat.shape[1]
    cout_p = _round_up(cout, LANE)
    tm = min(TM_MAX, _round_up(m, 8))
    m_pad = _round_up(m, tm)
    if m_pad != m:
        patches = jnp.pad(patches, ((0, m_pad - m), (0, 0)))
    if cout_p != cout:
        w_mat = jnp.pad(w_mat, ((0, 0), (0, cout_p - cout)))
    return (patches.astype(jnp.bfloat16), w_mat.astype(jnp.bfloat16),
            m, m_pad, tm, cout, cout_p)


# ----------------------------------------------------------------------------
# Layer wrappers
# ----------------------------------------------------------------------------
def conv2d_act(x, w_conv, *, stride, padding, act, slope=LEAKY_SLOPE):
    # x: (N, H, W, Cin) NHWC; w_conv: (k, k, Cin, Cout)
    n = x.shape[0]
    k, _, cin, cout = w_conv.shape
    patches, ho, wo = _im2col(_pad_nhwc(x, padding), k, stride)
    w_mat = w_conv.reshape(k * k * cin, cout)
    p_b, w_b, m, m_pad, tm, cout, cout_p = _prep_operands(patches, w_mat)
    kdim = p_b.shape[1]
    kern = functools.partial(_matmul_act_kernel, act=act, slope=slope)
    out = pl.pallas_call(
        kern,
        out_shape=jax.ShapeDtypeStruct((m_pad, cout_p), jnp.float32),
        grid=(m_pad // tm,),
        in_specs=[pl.BlockSpec((tm, kdim), lambda i: (i, 0)),
                  pl.BlockSpec((kdim, cout_p), lambda i: (0, 0))],
        out_specs=pl.BlockSpec((tm, cout_p), lambda i: (i, 0)),
        compiler_params=pltpu.CompilerParams(
            dimension_semantics=("parallel",),
            vmem_limit_bytes=VMEM_LIMIT),
    )(p_b, w_b)
    return out[:m, :cout].reshape(n, ho, wo, cout)


def conv2d_bn_lrelu(x, w_conv, gamma, beta, *, stride, padding,
                    slope=LEAKY_SLOPE, eps=EPS):
    n = x.shape[0]
    k, _, cin, cout = w_conv.shape
    patches, ho, wo = _im2col(_pad_nhwc(x, padding), k, stride)
    w_mat = w_conv.reshape(k * k * cin, cout)
    p_b, w_b, m, m_pad, tm, cout, cout_p = _prep_operands(patches, w_mat)
    kdim = p_b.shape[1]
    grid = (m_pad // tm,)

    # Pass 1: tiled matmul + per-channel sum / sum-of-squares accumulation.
    raw, csum, cssq = pl.pallas_call(
        _matmul_stats_kernel,
        out_shape=(jax.ShapeDtypeStruct((m_pad, cout_p), jnp.float32),
                   jax.ShapeDtypeStruct((1, cout_p), jnp.float32),
                   jax.ShapeDtypeStruct((1, cout_p), jnp.float32)),
        grid=grid,
        in_specs=[pl.BlockSpec((tm, kdim), lambda i: (i, 0)),
                  pl.BlockSpec((kdim, cout_p), lambda i: (0, 0))],
        out_specs=(pl.BlockSpec((tm, cout_p), lambda i: (i, 0)),
                   pl.BlockSpec((1, cout_p), lambda i: (0, 0)),
                   pl.BlockSpec((1, cout_p), lambda i: (0, 0))),
        compiler_params=pltpu.CompilerParams(
            dimension_semantics=("arbitrary",),
            vmem_limit_bytes=VMEM_LIMIT),
    )(p_b, w_b)

    # Pass 2: BatchNorm (training-mode batch stats over the real M rows) +
    # LeakyReLU, fully parallel over M tiles.
    g_p = jnp.pad(gamma.reshape(1, cout).astype(jnp.float32),
                  ((0, 0), (0, cout_p - cout)), constant_values=1.0)
    b_p = jnp.pad(beta.reshape(1, cout).astype(jnp.float32),
                  ((0, 0), (0, cout_p - cout)))
    kern = functools.partial(_bn_lrelu_kernel, slope=slope, eps=eps,
                             inv_count=1.0 / float(m))
    out = pl.pallas_call(
        kern,
        out_shape=jax.ShapeDtypeStruct((m_pad, cout_p), jnp.float32),
        grid=grid,
        in_specs=[pl.BlockSpec((tm, cout_p), lambda i: (i, 0)),
                  pl.BlockSpec((1, cout_p), lambda i: (0, 0)),
                  pl.BlockSpec((1, cout_p), lambda i: (0, 0)),
                  pl.BlockSpec((1, cout_p), lambda i: (0, 0)),
                  pl.BlockSpec((1, cout_p), lambda i: (0, 0))],
        out_specs=pl.BlockSpec((tm, cout_p), lambda i: (i, 0)),
        compiler_params=pltpu.CompilerParams(
            dimension_semantics=("parallel",),
            vmem_limit_bytes=VMEM_LIMIT),
    )(raw, csum, cssq, g_p, b_p)
    return out[:m, :cout].reshape(n, ho, wo, cout)


# ----------------------------------------------------------------------------
# Parameters (deterministic DCGAN-style init; Conv2d layers have bias=False)
# ----------------------------------------------------------------------------
def init_params(key, nc_total, ndf):
    cfg = [
        # (Cin, Cout, kernel, stride, padding, has_bn)
        (nc_total, ndf,     4, 2, 1, False),
        (ndf,      ndf * 2, 4, 2, 1, True),
        (ndf * 2,  ndf * 4, 4, 2, 1, True),
        (ndf * 4,  ndf * 8, 4, 2, 1, True),
        (ndf * 8,  1,       4, 1, 0, False),
    ]
    keys = jax.random.split(key, 2 * len(cfg))
    params = []
    for i, (cin, cout, k, s, p, bn) in enumerate(cfg):
        w = 0.02 * jax.random.normal(keys[2 * i], (k, k, cin, cout), jnp.float32)
        if bn:
            gamma = 1.0 + 0.02 * jax.random.normal(keys[2 * i + 1], (cout,),
                                                   jnp.float32)
            beta = jnp.zeros((cout,), jnp.float32)
        else:
            gamma = beta = None
        params.append(dict(w=w, gamma=gamma, beta=beta, stride=s, padding=p))
    return params


# ----------------------------------------------------------------------------
# Forward pass (mirrors _netC.forward, single-device branch)
# ----------------------------------------------------------------------------
def netC_forward(params, image, label_map):
    # image: (N, nc_img, H, W), label_map: (N, n_cls, H, W)  -- NCHW like torch
    x = jnp.concatenate([image, label_map], axis=1)   # torch.cat([input,label],1)
    x = jnp.transpose(x, (0, 2, 3, 1))                # NHWC for the kernels

    p = params[0]                                     # Conv + LeakyReLU(0.2)
    x = conv2d_act(x, p["w"], stride=p["stride"], padding=p["padding"],
                   act="lrelu")
    for p in params[1:4]:                             # Conv + BN + LeakyReLU
        x = conv2d_bn_lrelu(x, p["w"], p["gamma"], p["beta"],
                            stride=p["stride"], padding=p["padding"])
    p = params[4]                                     # final Conv + Sigmoid
    x = conv2d_act(x, p["w"], stride=p["stride"], padding=p["padding"],
                   act="sigmoid")
    return jnp.transpose(x, (0, 3, 1, 2))             # NCHW, shape (N, 1, 1, 1)


if __name__ == "__main__":
    key = jax.random.PRNGKey(0)
    k_param, k_img, k_lbl = jax.random.split(key, 3)

    N, ISIZE, NC_IMG, N_CLASSES, NDF = 2, 64, 3, 43, 16
    params = init_params(k_param, NC_IMG + N_CLASSES, NDF)

    image = jax.random.normal(k_img, (N, NC_IMG, ISIZE, ISIZE), jnp.float32)
    label_idx = jax.random.randint(k_lbl, (N,), 0, N_CLASSES)
    label_map = jnp.broadcast_to(
        jax.nn.one_hot(label_idx, N_CLASSES, dtype=jnp.float32)[:, :, None, None],
        (N, N_CLASSES, ISIZE, ISIZE))

    out = netC_forward(params, image, label_map)
    out = jax.block_until_ready(out)
    assert out.shape == (N, 1, 1, 1), out.shape
    assert bool(jnp.all(jnp.isfinite(out)))
    assert bool(jnp.all((out >= 0.0) & (out <= 1.0)))
    print("KERNEL_OK")
</pallas_src>

<mosaic_0001>
module attributes {stable_mosaic.version = 11 : i64} {
  func.func @_matmul_act_kernel(%arg0: i32, %arg1: memref<512x736xbf16, #tpu.memory_space<vmem>>, %arg2: memref<736x128xbf16, #tpu.memory_space<vmem>>, %arg3: memref<512x128xf32, #tpu.memory_space<vmem>>) attributes {dimension_semantics = [#tpu.dimension_semantics<parallel>], iteration_bounds = array<i64: 4>, scalar_prefetch = 0 : i64, scratch_operands = 0 : i64, tpu.core_type = #tpu.core_type<tc>, window_params = [{transform_indices = @transform_0, window_bounds = array<i64: 512, 736>}, {pipeline_mode = #tpu.pipeline_mode<synchronous>, transform_indices = @transform_1, window_bounds = array<i64: 736, 128>}, {transform_indices = @transform_2, window_bounds = array<i64: 512, 128>}]} {
    %c0 = arith.constant 0 : index
    %c0_0 = arith.constant 0 : index
    %0 = vector.load %arg1[%c0, %c0_0] : memref<512x736xbf16, #tpu.memory_space<vmem>>, vector<512x736xbf16>
    %c0_1 = arith.constant 0 : index
    %c0_2 = arith.constant 0 : index
    %1 = vector.load %arg2[%c0_1, %c0_2] : memref<736x128xbf16, #tpu.memory_space<vmem>>, vector<736x128xbf16>
    %cst = arith.constant dense<0.000000e+00> : vector<512x128xf32>
    %2 = tpu.matmul %0, %1, %cst {dimension_numbers = #tpu.dot_dimension_numbers<[1], [0], [0], [1], [0, 0, 1, 1], [], []>} : vector<512x736xbf16>, vector<736x128xbf16>, vector<512x128xf32> -> vector<512x128xf32>
    %cst_3 = arith.constant 0.000000e+00 : f32
    %3 = vector.broadcast %cst_3 : f32 to vector<512x128xf32>
    %4 = arith.cmpf oge, %2, %3 : vector<512x128xf32>
    %cst_4 = arith.constant 2.000000e-01 : f32
    %5 = vector.broadcast %cst_4 : f32 to vector<512x128xf32>
    %6 = arith.mulf %5, %2 : vector<512x128xf32>
    %7 = arith.select %4, %2, %6 : vector<512x128xi1>, vector<512x128xf32>
    %c0_5 = arith.constant 0 : index
    %c0_6 = arith.constant 0 : index
    %8 = vector.load %arg3[%c0_5, %c0_6] : memref<512x128xf32, #tpu.memory_space<vmem>>, vector<512x128xf32>
    tpu.vector_store %arg3[%c0_5, %c0_6], %7 {strides = array<i32>} : memref<512x128xf32, #tpu.memory_space<vmem>>, vector<512x128xf32>,
    return
  }
  func.func @transform_0(%arg0: i32) -> (i32, i32) {
    %c0_i32 = arith.constant 0 : i32
    %c0_i32_0 = arith.constant 0 : i32
    return %arg0, %c0_i32 : i32, i32
  }
  func.func @transform_1(%arg0: i32) -> (i32, i32) {
    %c0_i32 = arith.constant 0 : i32
    %c0_i32_0 = arith.constant 0 : i32
    %c0_i32_1 = arith.constant 0 : i32
    return %c0_i32, %c0_i32_0 : i32, i32
  }
  func.func @transform_2(%arg0: i32) -> (i32, i32) {
    %c0_i32 = arith.constant 0 : i32
    %c0_i32_0 = arith.constant 0 : i32
    return %arg0, %c0_i32 : i32, i32
  }
}

</mosaic_0001>

<bundles_post_ra>
// kernel: tpu_custom_call.1
= control target key start
LH: loop header
LB: loop body
LE: loop exit
PB: predicated region body
PF: predicated region fallthrough
CT: control target
= control target key end

     0   :  { %7 = vsyncpa [#allocation3], 0  ;;  %s4659_s0 = inlined_call_operand.vmem [shape: bf16[2048,736], index: 0, kind: input, shape index: {}]   ;;  %s4660_s1 = inlined_call_operand.vmem [shape: bf16[736,128], index: 1, kind: input, shape index: {}]   ;;  %s4661_s2 = inlined_call_operand.hbm [shape: f32[2048,128], index: 2, kind: output, shape index: {}]  }
   0x1   :  { %9 = vsyncpa [#allocation3 + $0x1], 0  ;;  %s3900_s9 = smov 0   ;;  %s3902_s10 = smov 0  }
   0x2   :  { %s3904_s11 = smov 0   ;;  %s3906_s12 = smov 0  }
   0x3 LB: > { %s3921_s13 = sadd.s32 4294967295, %s3879_s12   ;;  %s2933_s14 = sadd.s32 4294967294, %s3879_s12   ;;  %s3879_s12 = sphi %s3906_s12, %s4667_s12   ;;  %s3875_s11 = sphi %s3904_s11, %s4666_s11   ;;  %s3871_s10 = sphi %s3902_s10, %s4665_s10   ;;  %s3867_s9 = sphi %s3900_s9, %s4664_s9  }
   0x4   : > { %s3925_s15 = sadd.s32 1, %s3879_s12   ;;  %s69_s16 = sadd.s32 1, %s3875_s11 }
   0x5   : > { %s66_s17 = ssub.s32 %s3879_s12, %s3925_s15  ;;  %p79_p0 = scmp.ne.s32.totalorder %s3875_s11, %s3871_s10 }
   0x6   : > { %p67_p1 = scmp.eq.s32.totalorder %s66_s17, 0  ;;  %p80_p2 = scmp.eq.s32.totalorder %s3921_s13, 3 }
   0x7   : > { %p85_p3 = scmp.ne.s32.totalorder %s3871_s10, %s3867_s9  ;;  %p86_p4 = scmp.eq.s32.totalorder %s2933_s14, 3 }
   0x8   : > { %s3936_s18 = scalar_select %p67_p1, %s3875_s11, %s69_s16  }
   0x9   : > { %p3938_p5 = por %p80_p2, %p79_p0  ;;  %p3942_p6 = por %p86_p4, %p85_p3 }
   0xa   : > { %p2936_p7 = scmp.ge.s32.totalorder %s3879_s12, 1  ;;  %p117_p8 = scmp.lt.s32.totalorder %s3879_s12, 5 }
   0xc   : > { %p118_p9 = pnand %p2936_p7, %p117_p8 }
   0xd   : > { %v3483_v0 = vld [vmem:[%s4660_s1] sm:$0xff] (!%p118_p9)   ;;  %v3881_v1 = vmov (!%p118_p9), 0   ;;  %v3485_v3 = vld [vmem:[%s4660_s1 + $0x8] sm:$0xff] (!%p118_p9)   ;;  %v3487_v5 = vld [vmem:[%s4660_s1 + $0x10] sm:$0xff] (!%p118_p9)   ;;  %s2938_s22 = sshll.u32 (!%p118_p9), %s3921_s13, 6  ;;  %vm1637_vm0 = vcmask (!%p118_p9), 785408  }
   0xe   : > { %121 = sbr.rel (%p118_p9) target bundleno = 688 (0x2b0), region = 28  ;;  %1734 = vmatprep.subr.bf16.mxu1 (!%p118_p9), %v3881_v1  ;;  %2023 = vmatprep.subr.bf16.mxu0 (!%p118_p9), %v3881_v1  ;;  %v3956_v2 = vld [vmem:[%s4660_s1 + $0x80] sm:$0xff] (!%p118_p9)   ;;  %v3966_v4 = vld [vmem:[%s4660_s1 + $0x88] sm:$0xff] (!%p118_p9)   ;;  %v3977_v6 = vld [vmem:[%s4660_s1 + $0x90] sm:$0xff] (!%p118_p9)   ;;  %p141_p10 = scmp.lt.s32.totalorder (!%p118_p9), %s2938_s22, 255 }
   0xf   : > { %1735 = vmatpush1.bf16.msra.mxu1 (!%p118_p9), %v3483_v0  ;;  %2024 = vmatpush1.bf16.msra.mxu0 (!%p118_p9), %v3956_v2  ;;  %v3489_v7 = vld [vmem:[%s4660_s1 + $0x18] sm:$0xff] (!%p118_p9)   ;;  %v3491_v9 = vld [vmem:[%s4660_s1 + $0x20] sm:$0xff] (!%p118_p9)   ;;  %v3493_v11 = vld [vmem:[%s4660_s1 + $0x28] sm:$0xff] (!%p118_p9)   ;;  %s137_s26 = sand.u32 (!%p118_p9), 1, %s3871_s10   ;;  %s3882_s6 = smov (!%p118_p9), [#allocation2]  }
  0x10   : > { %1736 = vmatprep.subr.bf16.mxu1 (!%p118_p9), %v3881_v1  ;;  %2025 = vmatprep.subr.bf16.mxu0 (!%p118_p9), %v3881_v1  ;;  %v3988_v8 = vld [vmem:[%s4660_s1 + $0x98] sm:$0xff] (!%p118_p9)   ;;  %v3999_v10 = vld [vmem:[%s4660_s1 + $0xa0] sm:$0xff] (!%p118_p9)   ;;  %v4011_v12 = vld [vmem:[%s4660_s1 + $0xa8] sm:$0xff] (!%p118_p9)   ;;  %s2937_s27 = sshll.u32 (!%p118_p9), %s137_s26, 9  ;;  %s3821_s7 = sshll.u32 (!%p118_p9), %s3882_s6, 4  ;;  %s3822_s7 = int_to_ptr.vmem [resolvable:$false] %s3821_s7 }
  0x11   : > { %v3495_v13 = vld [vmem:[%s4660_s1 + $0x30] sm:$0xff] (!%p118_p9)   ;;  %v3497_v15 = vld [vmem:[%s4660_s1 + $0x38] sm:$0xff] (!%p118_p9)   ;;  %v3499_v17 = vld [vmem:[%s4660_s1 + $0x40] sm:$0xff] (!%p118_p9)   ;;  %s4493_s28 = scalar_lea.vmem (!%p118_p9), [#allocation2], %s2937_s27  ;;  %s3823_s8 = scalar_lea.vmem (!%p118_p9), %s3822_s7, 16384 }
  0x12   : > { %v4022_v14 = vld [vmem:[%s4660_s1 + $0xb0] sm:$0xff] (!%p118_p9)   ;;  %v4033_v16 = vld [vmem:[%s4660_s1 + $0xb8] sm:$0xff] (!%p118_p9)   ;;  %v4049_v18 = vld [vmem:[%s4660_s1 + $0xc0] sm:$0xff] (!%p118_p9)   ;;  %s2871_s29 = sshll.u32 (!%p118_p9), %s4493_s28, 4  ;;  %s4612_s29 = int_to_ptr.vmem [resolvable:$true] %s2871_s29 }
  0x13   : > { %1737 = vmatpush1.bf16.msra.mxu1 (!%p118_p9), %v3485_v3  ;;  %2026 = vmatpush1.bf16.msra.mxu0 (!%p118_p9), %v3966_v4  ;;  %v3501_v20 = vld [vmem:[%s4660_s1 + $0x48] sm:$0xff] (!%p118_p9)   ;;  %v3503_v23 = vld [vmem:[%s4660_s1 + $0x50] sm:$0xff] (!%p118_p9)   ;;  %v3505_v25 = vld [vmem:[%s4660_s1 + $0x58] sm:$0xff] (!%p118_p9)   ;;  %p3824_p0 = scmp.lt.s32.totalorder (!%p118_p9), %s4612_s29, %s3822_s7 }
  0x14   : > { %1738 = vmatprep.subr.bf16.mxu1 (!%p118_p9), %v3881_v1  ;;  %2027 = vmatprep.subr.bf16.mxu0 (!%p118_p9), %v3881_v1  ;;  %v4062_v22 = vld [vmem:[%s4660_s1 + $0xc8] sm:$0xff] (!%p118_p9)   ;;  %v4073_v24 = vld [vmem:[%s4660_s1 + $0xd0] sm:$0xff] (!%p118_p9)   ;;  %v4084_v26 = vld [vmem:[%s4660_s1 + $0xd8] sm:$0xff] (!%p118_p9)  }
  0x15   : > { %s4669_s22 = smov (!%p141_p10, %s2938_s22), 255  ;;  %v3507_v27 = vld [vmem:[%s4660_s1 + $0x60] sm:$0xff]   ;;  %v3509_v29 = vld [vmem:[%s4660_s1 + $0x68] sm:$0xff]   ;;  %v3511_v31 = vld [vmem:[%s4660_s1 + $0x70] sm:$0xff]  }
  0x16   : > { %s3440_s5 = smul.u32 24, %s4669_s22  ;;  %v4095_v28 = vld [vmem:[%s4660_s1 + $0xe0] sm:$0xff]   ;;  %v4106_v30 = vld [vmem:[%s4660_s1 + $0xe8] sm:$0xff]   ;;  %v4117_v32 = vld [vmem:[%s4660_s1 + $0xf0] sm:$0xff]  }
  0x17   : > { %1739 = vmatpush1.bf16.msra.mxu1 %v3487_v5  ;;  %2028 = vmatpush1.bf16.msra.mxu0 %v3977_v6  ;;  %v3513_v33 = vld [vmem:[%s4660_s1 + $0x78] sm:$0xff]   ;;  %v3521_v37 = vld [vmem:[%s4660_s1 + $0x100] sm:$0xff]   ;;  %v3528_v40 = vld [vmem:[%s4660_s1 + $0x108] sm:$0xff]  }
  0x18   : > { %1740 = vmatprep.subr.bf16.mxu1 %v3881_v1  ;;  %2029 = vmatprep.subr.bf16.mxu0 %v3881_v1  ;;  %s4042_s21 = scalar_lea.vmem %s4659_s0, %s3440_s5  ;;  %v4128_v34 = vld [vmem:[%s4660_s1 + $0xf8] sm:$0xff]   ;;  %v3535_v45 = vld [vmem:[%s4660_s1 + $0x110] sm:$0xff]   ;;  %v3549_v51 = vld [vmem:[%s4660_s1 + $0x120] sm:$0xff]   ;;  %s3817_s5 = scalar_lea.vmem %s4612_s29, 8192 }
  0x19   : > { %v3517_v19 = vld [vmem:[%s4042_s21 + $0x4] ss:$24 sps:$4 sm:$0xff]   ;;  %v3515_v35 = vld [vmem:[%s4042_s21] ss:$24 sps:$4 sm:$0xff]   ;;  %v3522_v38 = vld [vmem:[%s4042_s21 + $0x34] ss:$24 sps:$4 sm:$0xff]   ;;  %p3818_p11 = scmp.ne.s32.totalorder %s4612_s29, %s3817_s5  ;;  %p3825_p1 = scmp.lt.s32.totalorder %s3823_s8, %s3817_s5 }
  0x1a   : > { %v3520_v21 = vld [vmem:[%s4042_s21 + $0xc] ss:$24 sps:$4 sm:$0xff]   ;;  %1766 = vmatprep.mubr.bf16.mxu1 %v3517_v19  ;;  %v3518_v36 = vld [vmem:[%s4042_s21 + $0x8] ss:$24 sps:$4 sm:$0xff]   ;;  %v3524_v39 = vld [vmem:[%s4042_s21 + $0x3c] ss:$24 sps:$4 sm:$0xff]  }
  0x1b   : > { %1741 = vmatpush1.bf16.msra.mxu1 %v3489_v7  ;;  %2030 = vmatpush1.bf16.msra.mxu0 %v3988_v8  ;;  %v3526_v41 = vld [vmem:[%s4042_s21 + $0x30] ss:$24 sps:$4 sm:$0xff]   ;;  %v3529_v43 = vld [vmem:[%s4042_s21 + $0x64] ss:$24 sps:$4 sm:$0xff]   ;;  %v3533_v47 = vld [vmem:[%s4042_s21 + $0x60] ss:$24 sps:$4 sm:$0xff]   ;;  %p3819_p12 = pnand %p3818_p11, %p3938_p5  ;;  %p3826_p2 = por %p3825_p1, %p3824_p0 }
  0x1c   : > { %1742 = vmatprep.subr.bf16.mxu1 %v3881_v1  ;;  %2031 = vmatprep.subr.bf16.mxu0 %v3881_v1  ;;  %v3527_v42 = vld [vmem:[%s4042_s21 + $0x38] ss:$24 sps:$4 sm:$0xff]   ;;  %v3531_v44 = vld [vmem:[%s4042_s21 + $0x6c] ss:$24 sps:$4 sm:$0xff]   ;;  %v3534_v48 = vld [vmem:[%s4042_s21 + $0x68] ss:$24 sps:$4 sm:$0xff]  }
  0x1d   : > { %2055 = vmatprep.mubr.bf16.mxu0 %v3520_v21  ;;  %v3542_v46 = vld [vmem:[%s4660_s1 + $0x118] sm:$0xff]   ;;  %v3536_v49 = vld [vmem:[%s4042_s21 + $0x94] ss:$24 sps:$4 sm:$0xff]   ;;  %v3540_v53 = vld [vmem:[%s4042_s21 + $0x90] ss:$24 sps:$4 sm:$0xff]   ;;  %p3820_p13 = pneg %p3819_p12 }
  0x1e   : > { %v3538_v50 = vld [vmem:[%s4042_s21 + $0x9c] ss:$24 sps:$4 sm:$0xff]   ;;  %v3560_v52 = vld [vmem:[%s4660_s1 + $0x128] sm:$0xff]   ;;  %v3541_v54 = vld [vmem:[%s4042_s21 + $0x98] ss:$24 sps:$4 sm:$0xff]  }
  0x1f   : > { %1743 = vmatpush1.bf16.msra.mxu1 %v3491_v9  ;;  %2032 = vmatpush1.bf16.msra.mxu0 %v3999_v10  ;;  %v3543_v55 = vld [vmem:[%s4042_s21 + $0xc4] ss:$24 sps:$4 sm:$0xff]   ;;  %v3569_v57 = vld [vmem:[%s4660_s1 + $0x130] sm:$0xff]   ;;  %v3547_v59 = vld [vmem:[%s4042_s21 + $0xc0] ss:$24 sps:$4 sm:$0xff]   ;;  %p3827_p3 = pnand %p3826_p2, %p3820_p13 }
  0x20   : > { %1744 = vmatprep.subr.bf16.mxu1 %v3881_v1  ;;  %2033 = vmatprep.subr.bf16.mxu0 %v3881_v1  ;;  %v3545_v56 = vld [vmem:[%s4042_s21 + $0xcc] ss:$24 sps:$4 sm:$0xff]   ;;  %v3576_v58 = vld [vmem:[%s4660_s1 + $0x138] sm:$0xff]   ;;  %v3548_v60 = vld [vmem:[%s4042_s21 + $0xc8] ss:$24 sps:$4 sm:$0xff]  }
  0x21   : > { %v3550_v61 = vld [vmem:[%s4042_s21 + $0xf4] ss:$24 sps:$4 sm:$0xff]   ;;  %v3583_v63 = vld [vmem:[%s4660_s1 + $0x140] sm:$0xff]   ;;  %v3555_v3 = vld [vmem:[%s4042_s21 + $0xf8] ss:$24 sps:$4 sm:$0xff]  }
  0x22   : > { %v3552_v62 = vld [vmem:[%s4042_s21 + $0xfc] ss:$24 sps:$4 sm:$0xff]   ;;  %v3590_v0 = vld [vmem:[%s4660_s1 + $0x148] sm:$0xff]   ;;  %v3561_v7 = vld [vmem:[%s4042_s21 + $0x120] ss:$24 sps:$4 sm:$0xff]  }
  0x23   : > { %1745 = vmatpush1.bf16.msra.mxu1 %v3493_v11  ;;  %2034 = vmatpush1.bf16.msra.mxu0 %v4011_v12  ;;  %v3558_v5 = vld [vmem:[%s4042_s21 + $0x12c] ss:$24 sps:$4 sm:$0xff]   ;;  %v3562_v9 = vld [vmem:[%s4042_s21 + $0x128] ss:$24 sps:$4 sm:$0xff]   ;;  %v3565_v11 = vld [vmem:[%s4042_s21 + $0x15c] ss:$24 sps:$4 sm:$0xff]  }
  0x24   : > { %1746 = vmatprep.subr.bf16.mxu1 %v3881_v1  ;;  %2035 = vmatprep.subr.bf16.mxu0 %v3881_v1  ;;  %v3575_v19 = vld [vmem:[%s4042_s21 + $0x188] ss:$24 sps:$4 sm:$0xff]   ;;  %v3579_v21 = vld [vmem:[%s4042_s21 + $0x1bc] ss:$24 sps:$4 sm:$0xff]  }
  0x27   : > { %1747 = vmatpush1.bf16.msra.mxu1 %v3495_v13  ;;  %2036 = vmatpush1.bf16.msra.mxu0 %v4022_v14  ;;  %v3567_v13 = vld [vmem:[%s4042_s21 + $0x150] ss:$24 sps:$4 sm:$0xff]  }
  0x28   : > { %1748 = vmatprep.subr.bf16.mxu1 %v3881_v1  ;;  %2037 = vmatprep.subr.bf16.mxu0 %v3881_v1 }
  0x2b   : > { %1749 = vmatpush1.bf16.msra.mxu1 %v3497_v15  ;;  %2038 = vmatpush1.bf16.msra.mxu0 %v4033_v16  ;;  %v3568_v15 = vld [vmem:[%s4042_s21 + $0x158] ss:$24 sps:$4 sm:$0xff]  }
  0x2c   : > { %1750 = vmatprep.subr.bf16.mxu1 %v3881_v1  ;;  %2039 = vmatprep.subr.bf16.mxu0 %v3881_v1 }
  0x2f   : > { %1751 = vmatpush1.bf16.msra.mxu1 %v3499_v17  ;;  %2040 = vmatpush1.bf16.msra.mxu0 %v4049_v18  ;;  %v3572_v17 = vld [vmem:[%s4042_s21 + $0x18c] ss:$24 sps:$4 sm:$0xff]  }
  0x30   : > { %1752 = vmatprep.subr.bf16.mxu1 %v3881_v1  ;;  %2041 = vmatprep.subr.bf16.mxu0 %v3881_v1 }
  0x33   : > { %1753 = vmatpush1.bf16.msra.mxu1 %v3501_v20  ;;  %2042 = vmatpush1.bf16.msra.mxu0 %v4062_v22  ;;  %v3577_v20 = vld [vmem:[%s4042_s21 + $0x1b4] ss:$24 sps:$4 sm:$0xff]  }
  0x34   : > { %1754 = vmatprep.subr.bf16.mxu1 %v3881_v1  ;;  %2043 = vmatprep.subr.bf16.mxu0 %v3881_v1 }
  0x37   : > { %1755 = vmatpush1.bf16.msra.mxu1 %v3503_v23  ;;  %2044 = vmatpush1.bf16.msra.mxu0 %v4073_v24  ;;  %v3582_v23 = vld [vmem:[%s4042_s21 + $0x1b8] ss:$24 sps:$4 sm:$0xff]  }
  0x38   : > { %1756 = vmatprep.subr.bf16.mxu1 %v3881_v1  ;;  %2045 = vmatprep.subr.bf16.mxu0 %v3881_v1 }
  0x3b   : > { %1757 = vmatpush1.bf16.msra.mxu1 %v3505_v25  ;;  %2046 = vmatpush1.bf16.msra.mxu0 %v4084_v26  ;;  %v3586_v25 = vld [vmem:[%s4042_s21 + $0x1ec] ss:$24 sps:$4 sm:$0xff]  }
  0x3c   : > { %1758 = vmatprep.subr.bf16.mxu1 %v3881_v1  ;;  %2047 = vmatprep.subr.bf16.mxu0 %v3881_v1 }
  0x3f   : > { %1759 = vmatpush1.bf16.msra.mxu1 %v3507_v27  ;;  %2048 = vmatpush1.bf16.msra.mxu0 %v4095_v28  ;;  %v3591_v27 = vld [vmem:[%s4042_s21 + $0x214] ss:$24 sps:$4 sm:$0xff]  }
  0x40   : > { %1760 = vmatprep.subr.bf16.mxu1 %v3881_v1  ;;  %2049 = vmatprep.subr.bf16.mxu0 %v3881_v1 }
  0x43   : > { %1761 = vmatpush1.bf16.msra.mxu1 %v3509_v29  ;;  %2050 = vmatpush1.bf16.msra.mxu0 %v4106_v30  ;;  %v3595_v29 = vld [vmem:[%s4042_s21 + $0x210] ss:$24 sps:$4 sm:$0xff]  }
  0x44   : > { %1762 = vmatprep.subr.bf16.mxu1 %v3881_v1  ;;  %2051 = vmatprep.subr.bf16.mxu0 %v3881_v1 }
  0x47   : > { %1763 = vmatpush1.bf16.msra.mxu1 %v3511_v31  ;;  %2052 = vmatpush1.bf16.msra.mxu0 %v4117_v32  ;;  %v3598_v31 = vld [vmem:[%s4042_s21 + $0x244] ss:$24 sps:$4 sm:$0xff]  }
  0x48   : > { %1764 = vmatprep.subr.bf16.mxu1 %v3881_v1  ;;  %2053 = vmatprep.subr.bf16.mxu0 %v3881_v1 }
  0x4b   : > { %1765 = vmatpush1.bf16.msra.mxu1 %v3513_v33  ;;  %2054 = vmatpush1.bf16.msra.mxu0 %v4128_v34  ;;  %v3602_v33 = vld [vmem:[%s4042_s21 + $0x240] ss:$24 sps:$4 sm:$0xff]  }
  0x4c   : > { %3216 = vmatprep.subr.bf16.mxu1 %v3881_v1  ;;  %2312 = vmatprep.subr.bf16.mxu0 %v3881_v1 }
  0x4e   : > { %1767 = vmatmul.mubr.bf16.vlgmr.msra.gmra.mrb[0].mxu1 %v3515_v35  ;;  %2056 = vmatmul.mubr.bf16.vlgmr.msra.gmra.mrb[0].mxu0 %v3518_v36  ;;  %v3605_v35 = vld [vmem:[%s4042_s21 + $0x274] ss:$24 sps:$4 sm:$0xff]  }
  0x4f   : > { %3232 = vmatpush1.bf16.msra.mxu1 %v3956_v2  ;;  %2313 = vmatpush1.bf16.msra.mxu0 %v3521_v37  ;;  %v3554_v2 = vld [vmem:[%s4042_s21 + $0xf0] ss:$24 sps:$4 sm:$0xff]   ;;  %v3607_v36 = vld [vmem:[%s4042_s21 + $0x27c] ss:$24 sps:$4 sm:$0xff]  }
  0x50   : > { %1774 = vmatprep.mubr.bf16.mxu1 %v3522_v38  ;;  %2063 = vmatprep.mubr.bf16.mxu0 %v3524_v39  ;;  %v3609_v37 = vld [vmem:[%s4042_s21 + $0x270] ss:$24 sps:$4 sm:$0xff]   ;;  %v3611_v39 = vld [vmem:[%s4042_s21 + $0x2a4] ss:$24 sps:$4 sm:$0xff]  }
  0x51   : > { %2314 = vmatprep.subr.bf16.mxu0 %v3881_v1  ;;  %3217 = vmatprep.subr.bf16.mxu1 %v3881_v1  ;;  %v3610_v38 = vld [vmem:[%s4042_s21 + $0x278] ss:$24 sps:$4 sm:$0xff]  }
  0x53   : > { %3233 = vmatpush1.bf16.msra.mxu1 %v3966_v4  ;;  %2315 = vmatpush1.bf16.msra.mxu0 %v3528_v40  ;;  %v3556_v4 = vld [vmem:[%s4042_s21 + $0x124] ss:$24 sps:$4 sm:$0xff]  }
  0x54   : > { %3218 = vmatprep.subr.bf16.mxu1 %v3881_v1  ;;  %2316 = vmatprep.subr.bf16.mxu0 %v3881_v1  ;;  %v3613_v40 = vld [vmem:[%s4042_s21 + $0x2ac] ss:$24 sps:$4 sm:$0xff]  }
  0x56   : > { %1775 = vmatmul.mubr.bf16.gmra.mrb[4].mxu1 %v3526_v41  ;;  %2064 = vmatmul.mubr.bf16.gmra.mrb[4].mxu0 %v3527_v42  ;;  %v3616_v41 = vld [vmem:[%s4042_s21 + $0x2a0] ss:$24 sps:$4 sm:$0xff]  }
  0x57   : > { %1782 = vmatprep.mubr.bf16.mxu1 %v3529_v43  ;;  %2071 = vmatprep.mubr.bf16.mxu0 %v3531_v44  ;;  %v3617_v42 = vld [vmem:[%s4042_s21 + $0x2a8] ss:$24 sps:$4 sm:$0xff]   ;;  %v3618_v43 = vld [vmem:[%s4042_s21 + $0x2d4] ss:$24 sps:$4 sm:$0xff]  }
  0x58   : > { %2317 = vmatpush1.bf16.msra.mxu0 %v3535_v45  ;;  %3234 = vmatpush1.bf16.msra.mxu1 %v3977_v6  ;;  %v3597_v6 = vld [vmem:[%s4660_s1 + $0x150] sm:$0xff]  }
  0x59   : > { %2318 = vmatprep.subr.bf16.mxu0 %v3881_v1  ;;  %3219 = vmatprep.subr.bf16.mxu1 %v3881_v1  ;;  %v3620_v44 = vld [vmem:[%s4042_s21 + $0x2dc] ss:$24 sps:$4 sm:$0xff]   ;;  %v3622_v45 = vld [vmem:[%s4042_s21 + $0x2d0] ss:$24 sps:$4 sm:$0xff]  }
  0x5c   : > { %2319 = vmatpush1.bf16.msra.mxu0 %v3542_v46  ;;  %3235 = vmatpush1.bf16.msra.mxu1 %v3988_v8  ;;  %v3604_v8 = vld [vmem:[%s4660_s1 + $0x158] sm:$0xff]  }
  0x5d   : > { %2320 = vmatprep.subr.bf16.mxu0 %v3881_v1  ;;  %3220 = vmatprep.subr.bf16.mxu1 %v3881_v1  ;;  %v3623_v46 = vld [vmem:[%s4042_s21 + $0x2d8] ss:$24 sps:$4 sm:$0xff]  }
  0x5e   : > { %1783 = vmatmul.mubr.bf16.gmra.mrb[8].mxu1 %v3533_v47  ;;  %2072 = vmatmul.mubr.bf16.gmra.mrb[8].mxu0 %v3534_v48  ;;  %v3625_v47 = vld [vmem:[%s4042_s21 + $0x304] ss:$24 sps:$4 sm:$0xff]   ;;  %v3629_v48 = vld [vmem:[%s4042_s21 + $0x14] ss:$24 sps:$4 sm:$0xff]  }
  0x5f   : > { %1790 = vmatprep.mubr.bf16.mxu1 %v3536_v49  ;;  %2079 = vmatprep.mubr.bf16.mxu0 %v3538_v50  ;;  %v3630_v49 = vld [vmem:[%s4042_s21 + $0x300] ss:$24 sps:$4 sm:$0xff]   ;;  %v3627_v50 = vld [vmem:[%s4042_s21 + $0x10] ss:$24 sps:$4 sm:$0xff]  }
  0x60   : > { %2321 = vmatpush1.bf16.msra.mxu0 %v3549_v51  ;;  %3236 = vmatpush1.bf16.msra.mxu1 %v3999_v10  ;;  %v3563_v10 = vld [vmem:[%s4042_s21 + $0x154] ss:$24 sps:$4 sm:$0xff]  }
  0x61   : > { %2322 = vmatprep.subr.bf16.mxu0 %v3881_v1  ;;  %3221 = vmatprep.subr.bf16.mxu1 %v3881_v1  ;;  %v3631_v51 = vld [vmem:[%s4042_s21 + $0x334] ss:$24 sps:$4 sm:$0xff]  }
  0x64   : > { %2323 = vmatpush1.bf16.msra.mxu0 %v3560_v52  ;;  %3237 = vmatpush1.bf16.msra.mxu1 %v4011_v12  ;;  %v3615_v12 = vld [vmem:[%s4660_s1 + $0x160] sm:$0xff]  }
  0x65   : > { %2324 = vmatprep.subr.bf16.mxu0 %v3881_v1  ;;  %3222 = vmatprep.subr.bf16.mxu1 %v3881_v1  ;;  %v3633_v52 = vld [vmem:[%s4042_s21 + $0x44] ss:$24 sps:$4 sm:$0xff]  }
  0x66   : > { %1791 = vmatmul.mubr.bf16.gmra.mrb[12].mxu1 %v3540_v53  ;;  %2080 = vmatmul.mubr.bf16.gmra.mrb[12].mxu0 %v3541_v54  ;;  %v3635_v53 = vld [vmem:[%s4042_s21 + $0x330] ss:$24 sps:$4 sm:$0xff]   ;;  %v3636_v54 = vld [vmem:[%s4042_s21 + $0x40] ss:$24 sps:$4 sm:$0xff]  }
  0x67   : > { %1798 = vmatprep.mubr.bf16.mxu1 %v3543_v55  ;;  %2087 = vmatprep.mubr.bf16.mxu0 %v3545_v56  ;;  %v3637_v55 = vld [vmem:[%s4042_s21 + $0x364] ss:$24 sps:$4 sm:$0xff]   ;;  %v3639_v56 = vld [vmem:[%s4042_s21 + $0x74] ss:$24 sps:$4 sm:$0xff]  }
  0x68   : > { %2325 = vmatpush1.bf16.msra.mxu0 %v3569_v57  ;;  %3238 = vmatpush1.bf16.msra.mxu1 %v4022_v14  ;;  %v3624_v14 = vld [vmem:[%s4660_s1 + $0x168] sm:$0xff]   ;;  %v3641_v57 = vld [vmem:[%s4042_s21 + $0x360] ss:$24 sps:$4 sm:$0xff]  }
  0x69   : > { %2326 = vmatprep.subr.bf16.mxu0 %v3881_v1  ;;  %3223 = vmatprep.subr.bf16.mxu1 %v3881_v1 }
  0x6c   : > { %2327 = vmatpush1.bf16.msra.mxu0 %v3576_v58  ;;  %3239 = vmatpush1.bf16.msra.mxu1 %v4033_v16  ;;  %v3570_v16 = vld [vmem:[%s4042_s21 + $0x184] ss:$24 sps:$4 sm:$0xff]   ;;  %v3642_v58 = vld [vmem:[%s4042_s21 + $0x70] ss:$24 sps:$4 sm:$0xff]  }
  0x6d   : > { %2328 = vmatprep.subr.bf16.mxu0 %v3881_v1  ;;  %3224 = vmatprep.subr.bf16.mxu1 %v3881_v1 }
  0x6e   : > { %1799 = vmatmul.mubr.bf16.gmra.mrb[16].mxu1 %v3547_v59  ;;  %2088 = vmatmul.mubr.bf16.gmra.mrb[16].mxu0 %v3548_v60  ;;  %v3643_v59 = vld [vmem:[%s4042_s21 + $0x394] ss:$24 sps:$4 sm:$0xff]   ;;  %v3645_v60 = vld [vmem:[%s4042_s21 + $0xa4] ss:$24 sps:$4 sm:$0xff]  }
  0x6f   : > { %1806 = vmatprep.mubr.bf16.mxu1 %v3550_v61  ;;  %2095 = vmatprep.mubr.bf16.mxu0 %v3552_v62  ;;  %v3647_v61 = vld [vmem:[%s4042_s21 + $0x390] ss:$24 sps:$4 sm:$0xff]   ;;  %v3648_v62 = vld [vmem:[%s4042_s21 + $0xa0] ss:$24 sps:$4 sm:$0xff]  }
  0x70   : > { %2329 = vmatpush1.bf16.msra.mxu0 %v3583_v63  ;;  %3240 = vmatpush1.bf16.msra.mxu1 %v4049_v18  ;;  %v3574_v18 = vld [vmem:[%s4042_s21 + $0x180] ss:$24 sps:$4 sm:$0xff]   ;;  %v3649_v63 = vld [vmem:[%s4042_s21 + $0x3c4] ss:$24 sps:$4 sm:$0xff]  }
  0x71   : > { %2330 = vmatprep.subr.bf16.mxu0 %v3881_v1  ;;  %3225 = vmatprep.subr.bf16.mxu1 %v3881_v1 }
  0x74   : > { %2331 = vmatpush1.bf16.msra.mxu0 %v3590_v0  ;;  %3241 = vmatpush1.bf16.msra.mxu1 %v4062_v22  ;;  %v3581_v22 = vld [vmem:[%s4042_s21 + $0x1b0] ss:$24 sps:$4 sm:$0xff]   ;;  %v3651_v0 = vld [vmem:[%s4042_s21 + $0xd4] ss:$24 sps:$4 sm:$0xff]  }
  0x75   : > { %2332 = vmatprep.subr.bf16.mxu0 %v3881_v1  ;;  %3226 = vmatprep.subr.bf16.mxu1 %v3881_v1 }
  0x76   : > { %1807 = vmatmul.mubr.bf16.gmra.mrb[20].mxu1 %v3554_v2  ;;  %2096 = vmatmul.mubr.bf16.gmra.mrb[20].mxu0 %v3555_v3  ;;  %v3653_v2 = vld [vmem:[%s4042_s21 + $0x3c0] ss:$24 sps:$4 sm:$0xff]   ;;  %v3654_v3 = vld [vmem:[%s4042_s21 + $0xd0] ss:$24 sps:$4 sm:$0xff]  }
  0x77   : > { %1814 = vmatprep.mubr.bf16.mxu1 %v3556_v4  ;;  %2103 = vmatprep.mubr.bf16.mxu0 %v3558_v5  ;;  %v3655_v4 = vld [vmem:[%s4042_s21 + $0x3f4] ss:$24 sps:$4 sm:$0xff]   ;;  %v3657_v5 = vld [vmem:[%s4042_s21 + $0x104] ss:$24 sps:$4 sm:$0xff]  }
  0x78   : > { %2333 = vmatpush1.bf16.msra.mxu0 %v3597_v6  ;;  %3242 = vmatpush1.bf16.msra.mxu1 %v4073_v24  ;;  %v3584_v24 = vld [vmem:[%s4042_s21 + $0x1e4] ss:$24 sps:$4 sm:$0xff]   ;;  %v3659_v6 = vld [vmem:[%s4042_s21 + $0x3f0] ss:$24 sps:$4 sm:$0xff]  }
  0x79   : > { %2334 = vmatprep.subr.bf16.mxu0 %v3881_v1  ;;  %3227 = vmatprep.subr.bf16.mxu1 %v3881_v1 }
  0x7c   : > { %2335 = vmatpush1.bf16.msra.mxu0 %v3604_v8  ;;  %3243 = vmatpush1.bf16.msra.mxu1 %v4084_v26  ;;  %v3589_v26 = vld [vmem:[%s4042_s21 + $0x1e8] ss:$24 sps:$4 sm:$0xff]   ;;  %v3661_v8 = vld [vmem:[%s4042_s21 + $0x424] ss:$24 sps:$4 sm:$0xff]  }
  0x7d   : > { %2336 = vmatprep.subr.bf16.mxu0 %v3881_v1  ;;  %3228 = vmatprep.subr.bf16.mxu1 %v3881_v1 }
  0x7e   : > { %1815 = vmatmul.mubr.bf16.gmra.mrb[24].mxu1 %v3561_v7  ;;  %2104 = vmatmul.mubr.bf16.gmra.mrb[24].mxu0 %v3562_v9  ;;  %v3660_v7 = vld [vmem:[%s4042_s21 + $0x100] ss:$24 sps:$4 sm:$0xff]   ;;  %v3663_v9 = vld [vmem:[%s4042_s21 + $0x134] ss:$24 sps:$4 sm:$0xff]  }
  0x7f   : > { %1822 = vmatprep.mubr.bf16.mxu1 %v3563_v10  ;;  %2111 = vmatprep.mubr.bf16.mxu0 %v3565_v11  ;;  %v3665_v10 = vld [vmem:[%s4042_s21 + $0x420] ss:$24 sps:$4 sm:$0xff]   ;;  %v3666_v11 = vld [vmem:[%s4042_s21 + $0x130] ss:$24 sps:$4 sm:$0xff]  }
  0x80   : > { %2337 = vmatpush1.bf16.msra.mxu0 %v3615_v12  ;;  %3244 = vmatpush1.bf16.msra.mxu1 %v4095_v28  ;;  %v3593_v28 = vld [vmem:[%s4042_s21 + $0x21c] ss:$24 sps:$4 sm:$0xff]  }
  0x81   : > { %2338 = vmatprep.subr.bf16.mxu0 %v3881_v1  ;;  %3229 = vmatprep.subr.bf16.mxu1 %v3881_v1  ;;  %v3667_v12 = vld [vmem:[%s4042_s21 + $0x454] ss:$24 sps:$4 sm:$0xff]  }
  0x84   : > { %2339 = vmatpush1.bf16.msra.mxu0 %v3624_v14  ;;  %3245 = vmatpush1.bf16.msra.mxu1 %v4106_v30  ;;  %v3596_v30 = vld [vmem:[%s4042_s21 + $0x218] ss:$24 sps:$4 sm:$0xff]  }
  0x85   : > { %3230 = vmatprep.subr.bf16.mxu1 %v3881_v1  ;;  %v3671_v14 = vld [vmem:[%s4042_s21 + $0x450] ss:$24 sps:$4 sm:$0xff]  }
  0x86   : > { %1823 = vmatmul.mubr.bf16.gmra.mrb[28].mxu1 %v3567_v13  ;;  %2112 = vmatmul.mubr.bf16.gmra.mrb[28].mxu0 %v3568_v15  ;;  %v3669_v13 = vld [vmem:[%s4042_s21 + $0x164] ss:$24 sps:$4 sm:$0xff]   ;;  %v3672_v15 = vld [vmem:[%s4042_s21 + $0x160] ss:$24 sps:$4 sm:$0xff]  }
  0x87   : > { %1830 = vmatprep.mubr.bf16.mxu1 %v3570_v16  ;;  %2119 = vmatprep.mubr.bf16.mxu0 %v3572_v17  ;;  %v3673_v16 = vld [vmem:[%s4042_s21 + $0x484] ss:$24 sps:$4 sm:$0xff]   ;;  %v3675_v17 = vld [vmem:[%s4042_s21 + $0x194] ss:$24 sps:$4 sm:$0xff]  }
  0x88   : > { %3246 = vmatpush1.bf16.msra.mxu1 %v4117_v32  ;;  %v3600_v32 = vld [vmem:[%s4042_s21 + $0x24c] ss:$24 sps:$4 sm:$0xff]  }
  0x89   : > { %3231 = vmatprep.subr.bf16.mxu1 %v3881_v1  ;;  %v3588_v1 = vld [vmem:[%s4042_s21 + $0x1e0] ss:$24 sps:$4 sm:$0xff]  }
  0x8c   : > { %3247 = vmatpush1.bf16.msra.mxu1 %v4128_v34  ;;  %v3603_v34 = vld [vmem:[%s4042_s21 + $0x248] ss:$24 sps:$4 sm:$0xff]  }
  0x8e   : > { %1831 = vmatmul.mubr.bf16.gmra.mrb[32].mxu1 %v3574_v18  ;;  %2120 = vmatmul.mubr.bf16.gmra.mrb[32].mxu0 %v3575_v19  ;;  %v3677_v18 = vld [vmem:[%s4042_s21 + $0x480] ss:$24 sps:$4 sm:$0xff]   ;;  %v3678_v19 = vld [vmem:[%s4042_s21 + $0x190] ss:$24 sps:$4 sm:$0xff]  }
  0x8f   : > { %1838 = vmatprep.mubr.bf16.mxu1 %v3577_v20  ;;  %2127 = vmatprep.mubr.bf16.mxu0 %v3579_v21  ;;  %v3679_v20 = vld [vmem:[%s4042_s21 + $0x4b4] ss:$24 sps:$4 sm:$0xff]   ;;  %v3681_v21 = vld [vmem:[%s4042_s21 + $0x1c4] ss:$24 sps:$4 sm:$0xff]  }
  0x96   : > { %1839 = vmatmul.mubr.bf16.gmra.mrb[36].mxu1 %v3581_v22  ;;  %2128 = vmatmul.mubr.bf16.gmra.mrb[36].mxu0 %v3582_v23  ;;  %v3683_v22 = vld [vmem:[%s4042_s21 + $0x4b0] ss:$24 sps:$4 sm:$0xff]   ;;  %v3684_v23 = vld [vmem:[%s4042_s21 + $0x1c0] ss:$24 sps:$4 sm:$0xff]  }
  0x97   : > { %1846 = vmatprep.mubr.bf16.mxu1 %v3584_v24  ;;  %2135 = vmatprep.mubr.bf16.mxu0 %v3586_v25  ;;  %v3685_v24 = vld [vmem:[%s4042_s21 + $0x4e4] ss:$24 sps:$4 sm:$0xff]   ;;  %v3687_v25 = vld [vmem:[%s4042_s21 + $0x1f4] ss:$24 sps:$4 sm:$0xff]  }
  0x9e   : > { %1847 = vmatmul.mubr.bf16.gmra.mrb[40].mxu1 %v3588_v1  ;;  %2136 = vmatmul.mubr.bf16.gmra.mrb[40].mxu0 %v3589_v26  ;;  %v3689_v1 = vld [vmem:[%s4042_s21 + $0x4e0] ss:$24 sps:$4 sm:$0xff]   ;;  %v3690_v26 = vld [vmem:[%s4042_s21 + $0x1f0] ss:$24 sps:$4 sm:$0xff]  }
  0x9f   : > { %1854 = vmatprep.mubr.bf16.mxu1 %v3591_v27  ;;  %2143 = vmatprep.mubr.bf16.mxu0 %v3593_v28  ;;  %v3691_v27 = vld [vmem:[%s4042_s21 + $0x514] ss:$24 sps:$4 sm:$0xff]   ;;  %v3693_v28 = vld [vmem:[%s4042_s21 + $0x224] ss:$24 sps:$4 sm:$0xff]  }
  0xa6   : > { %1855 = vmatmul.mubr.bf16.gmra.mrb[44].mxu1 %v3595_v29  ;;  %2144 = vmatmul.mubr.bf16.gmra.mrb[44].mxu0 %v3596_v30 }
  0xa7   : > { %1862 = vmatprep.mubr.bf16.mxu1 %v3598_v31  ;;  %2151 = vmatprep.mubr.bf16.mxu0 %v3600_v32  ;;  %v3695_v31 = vld [vmem:[%s4042_s21 + $0x510] ss:$24 sps:$4 sm:$0xff]  }
  0xae   : > { %1863 = vmatmul.mubr.bf16.gmra.mrb[48].mxu1 %v3602_v33  ;;  %2152 = vmatmul.mubr.bf16.gmra.mrb[48].mxu0 %v3603_v34  ;;  %v3696_v33 = vld [vmem:[%s4042_s21 + $0x220] ss:$24 sps:$4 sm:$0xff]   ;;  %v3697_v34 = vld [vmem:[%s4042_s21 + $0x544] ss:$24 sps:$4 sm:$0xff]  }
  0xaf   : > { %1870 = vmatprep.mubr.bf16.mxu1 %v3605_v35  ;;  %2159 = vmatprep.mubr.bf16.mxu0 %v3607_v36  ;;  %v3699_v36 = vld [vmem:[%s4042_s21 + $0x254] ss:$24 sps:$4 sm:$0xff]  }
  0xb6   : > { %1871 = vmatmul.mubr.bf16.gmra.mrb[52].mxu1 %v3609_v37  ;;  %2160 = vmatmul.mubr.bf16.gmra.mrb[52].mxu0 %v3610_v38 }
  0xb7   : > { %1878 = vmatprep.mubr.bf16.mxu1 %v3611_v39  ;;  %2167 = vmatprep.mubr.bf16.mxu0 %v3613_v40  ;;  %v3701_v39 = vld [vmem:[%s4042_s21 + $0x540] ss:$24 sps:$4 sm:$0xff]  }
  0xbe   : > { %1879 = vmatmul.mubr.bf16.gmra.mrb[56].mxu1 %v3616_v41  ;;  %2168 = vmatmul.mubr.bf16.gmra.mrb[56].mxu0 %v3617_v42  ;;  %v3702_v41 = vld [vmem:[%s4042_s21 + $0x250] ss:$24 sps:$4 sm:$0xff]   ;;  %v3703_v42 = vld [vmem:[%s4042_s21 + $0x574] ss:$24 sps:$4 sm:$0xff]  }
  0xbf   : > { %1886 = vmatprep.mubr.bf16.mxu1 %v3618_v43  ;;  %2175 = vmatprep.mubr.bf16.mxu0 %v3620_v44  ;;  %v3705_v44 = vld [vmem:[%s4042_s21 + $0x284] ss:$24 sps:$4 sm:$0xff]  }
  0xc6   : > { %1887 = vmatmul.mubr.bf16.gmra.mrb[60].mxu1 %v3622_v45  ;;  %2176 = vmatmul.mubr.bf16.gmra.mrb[60].mxu0 %v3623_v46 }
  0xc7   : > { %1894 = vmatprep.mubr.bf16.mxu1 %v3625_v47  ;;  %3178 = vmatprep.mubr.msk.bf16.mxu0 %vm1637_vm0, %v3629_v48  ;;  %v3707_v47 = vld [vmem:[%s4042_s21 + $0x570] ss:$24 sps:$4 sm:$0xff]  }
  0xce   : > { %1895 = vmatmul.mubr.bf16.gmra.mrb[64].mxu1 %v3630_v49  ;;  %2345 = vmatmul.mubr.bf16.vlgmr.msra.gmra.mrb[0].mxu0 %v3627_v50  ;;  %v3708_v49 = vld [vmem:[%s4042_s21 + $0x280] ss:$24 sps:$4 sm:$0xff]   ;;  %v3709_v50 = vld [vmem:[%s4042_s21 + $0x5a4] ss:$24 sps:$4 sm:$0xff]  }
  0xcf   : > { %1902 = vmatprep.mubr.bf16.mxu1 %v3631_v51  ;;  %3179 = vmatprep.mubr.msk.bf16.mxu0 %vm1637_vm0, %v3633_v52  ;;  %v3711_v52 = vld [vmem:[%s4042_s21 + $0x2b4] ss:$24 sps:$4 sm:$0xff]  }
  0xd6   : > { %1903 = vmatmul.mubr.bf16.gmra.mrb[68].mxu1 %v3635_v53  ;;  %2353 = vmatmul.mubr.bf16.gmra.mrb[4].mxu0 %v3636_v54 }
  0xd7   : > { %1910 = vmatprep.mubr.bf16.mxu1 %v3637_v55  ;;  %3180 = vmatprep.mubr.msk.bf16.mxu0 %vm1637_vm0, %v3639_v56  ;;  %v3713_v55 = vld [vmem:[%s4042_s21 + $0x5a0] ss:$24 sps:$4 sm:$0xff]  }
  0xde   : > { %1911 = vmatmul.mubr.bf16.gmra.mrb[72].mxu1 %v3641_v57  ;;  %2361 = vmatmul.mubr.bf16.gmra.mrb[8].mxu0 %v3642_v58  ;;  %v3714_v57 = vld [vmem:[%s4042_s21 + $0x2b0] ss:$24 sps:$4 sm:$0xff]   ;;  %v3715_v58 = vld [vmem:[%s4042_s21 + $0x5d4] ss:$24 sps:$4 sm:$0xff]  }
  0xdf   : > { %1918 = vmatprep.mubr.bf16.mxu1 %v3643_v59  ;;  %3181 = vmatprep.mubr.msk.bf16.mxu0 %vm1637_vm0, %v3645_v60  ;;  %v3717_v60 = vld [vmem:[%s4042_s21 + $0x2e4] ss:$24 sps:$4 sm:$0xff]  }
  0xe6   : > { %1919 = vmatmul.mubr.bf16.gmra.mrb[76].mxu1 %v3647_v61  ;;  %2369 = vmatmul.mubr.bf16.gmra.mrb[12].mxu0 %v3648_v62 }
  0xe7   : > { %1926 = vmatprep.mubr.bf16.mxu1 %v3649_v63  ;;  %3182 = vmatprep.mubr.msk.bf16.mxu0 %vm1637_vm0, %v3651_v0  ;;  %v3719_v63 = vld [vmem:[%s4042_s21 + $0x5d0] ss:$24 sps:$4 sm:$0xff]  }
  0xee   : > { %1927 = vmatmul.mubr.bf16.gmra.mrb[80].mxu1 %v3653_v2  ;;  %2377 = vmatmul.mubr.bf16.gmra.mrb[16].mxu0 %v3654_v3  ;;  %v3720_v2 = vld [vmem:[%s4042_s21 + $0x2e0] ss:$24 sps:$4 sm:$0xff]   ;;  %v3723_v3 = vld [vmem:[%s4042_s21 + $0x30c] ss:$24 sps:$4 sm:$0xff]  }
  0xef   : > { %1934 = vmatprep.mubr.bf16.mxu1 %v3655_v4  ;;  %3183 = vmatprep.mubr.msk.bf16.mxu0 %vm1637_vm0, %v3657_v5  ;;  %v3724_v5 = vld [vmem:[%s4042_s21 + $0x314] ss:$24 sps:$4 sm:$0xff]  }
  0xf6   : > { %1935 = vmatmul.mubr.bf16.gmra.mrb[84].mxu1 %v3659_v6  ;;  %2385 = vmatmul.mubr.bf16.gmra.mrb[20].mxu0 %v3660_v7 }
  0xf7   : > { %1942 = vmatprep.mubr.bf16.mxu1 %v3661_v8  ;;  %3184 = vmatprep.mubr.msk.bf16.mxu0 %vm1637_vm0, %v3663_v9  ;;  %v3721_v8 = vld [vmem:[%s4042_s21 + $0x308] ss:$24 sps:$4 sm:$0xff]  }
  0xfe   : > { %1943 = vmatmul.mubr.bf16.gmra.mrb[88].mxu1 %v3665_v10  ;;  %2393 = vmatmul.mubr.bf16.gmra.mrb[24].mxu0 %v3666_v11  ;;  %v3726_v10 = vld [vmem:[%s4042_s21 + $0x310] ss:$24 sps:$4 sm:$0xff]   ;;  %v3727_v11 = vld [vmem:[%s4042_s21 + $0x33c] ss:$24 sps:$4 sm:$0xff]  }
  0xff   : > { %1950 = vmatprep.mubr.bf16.mxu1 %v3667_v12  ;;  %3185 = vmatprep.mubr.msk.bf16.mxu0 %vm1637_vm0, %v3669_v13  ;;  %v3729_v13 = vld [vmem:[%s4042_s21 + $0x344] ss:$24 sps:$4 sm:$0xff]  }
 0x106   : > { %1951 = vmatmul.mubr.bf16.gmra.mrb[92].mxu1 %v3671_v14  ;;  %2401 = vmatmul.mubr.bf16.gmra.mrb[28].mxu0 %v3672_v15 }
 0x107   : > { %1958 = vmatprep.mubr.bf16.mxu1 %v3673_v16  ;;  %3186 = vmatprep.mubr.msk.bf16.mxu0 %vm1637_vm0, %v3675_v17  ;;  %v3731_v16 = vld [vmem:[%s4042_s21 + $0x338] ss:$24 sps:$4 sm:$0xff]  }
 0x10e   : > { %1959 = vmatmul.mubr.bf16.gmra.mrb[96].mxu1 %v3677_v18  ;;  %2409 = vmatmul.mubr.bf16.gmra.mrb[32].mxu0 %v3678_v19  ;;  %v3732_v18 = vld [vmem:[%s4042_s21 + $0x340] ss:$24 sps:$4 sm:$0xff]   ;;  %v3733_v19 = vld [vmem:[%s4042_s21 + $0x36c] ss:$24 sps:$4 sm:$0xff]  }
 0x10f   : > { %1966 = vmatprep.mubr.bf16.mxu1 %v3679_v20  ;;  %3187 = vmatprep.mubr.msk.bf16.mxu0 %vm1637_vm0, %v3681_v21  ;;  %v3735_v21 = vld [vmem:[%s4042_s21 + $0x374] ss:$24 sps:$4 sm:$0xff]  }
 0x116   : > { %1967 = vmatmul.mubr.bf16.gmra.mrb[100].mxu1 %v3683_v22  ;;  %2417 = vmatmul.mubr.bf16.gmra.mrb[36].mxu0 %v3684_v23 }
 0x117   : > { %1974 = vmatprep.mubr.bf16.mxu1 %v3685_v24  ;;  %3188 = vmatprep.mubr.msk.bf16.mxu0 %vm1637_vm0, %v3687_v25  ;;  %v3737_v24 = vld [vmem:[%s4042_s21 + $0x368] ss:$24 sps:$4 sm:$0xff]  }
 0x11e   : > { %1975 = vmatmul.mubr.bf16.gmra.mrb[104].mxu1 %v3689_v1  ;;  %2425 = vmatmul.mubr.bf16.gmra.mrb[40].mxu0 %v3690_v26  ;;  %v3738_v1 = vld [vmem:[%s4042_s21 + $0x370] ss:$24 sps:$4 sm:$0xff]   ;;  %v3739_v26 = vld [vmem:[%s4042_s21 + $0x39c] ss:$24 sps:$4 sm:$0xff]  }
 0x11f   : > { %1982 = vmatprep.mubr.bf16.mxu1 %v3691_v27  ;;  %3189 = vmatprep.mubr.msk.bf16.mxu0 %vm1637_vm0, %v3693_v28  ;;  %v3741_v28 = vld [vmem:[%s4042_s21 + $0x3a4] ss:$24 sps:$4 sm:$0xff]  }
 0x121   : > { %v4340_v29 = vpop.f32.mrb[0].mxu1 }
 0x122   : > { %v1770_v30 = vpop.f32.mrb[1].mxu1 }
 0x123   : > { %v4343_v32 = vpop.f32.mrb[2].mxu1 }
 0x124   : > { %v1773_v35 = vpop.f32.mrb[3].mxu1 }
 0x125   : > { %v3744_v35 = vld [vmem:[%s4042_s21 + $0x3a0] ss:$24 sps:$4 sm:$0xff]  }
 0x126   : > { %1983 = vmatmul.mubr.bf16.gmra.mrb[108].mxu1 %v3695_v31  ;;  %2433 = vmatmul.mubr.bf16.gmra.mrb[44].mxu0 %v3696_v33  ;;  %v3743_v33 = vld [vmem:[%s4042_s21 + $0x398] ss:$24 sps:$4 sm:$0xff]  }
 0x127   : > { %1990 = vmatprep.mubr.bf16.mxu1 %v3697_v34  ;;  %3190 = vmatprep.mubr.msk.bf16.mxu0 %vm1637_vm0, %v3699_v36  ;;  %v3745_v36 = vld [vmem:[%s4042_s21 + $0x3cc] ss:$24 sps:$4 sm:$0xff]  }
 0x129   : > { %v4349_v37 = vpop.f32.mrb[4].mxu1 }
 0x12a   : > { %v1778_v38 = vpop.f32.mrb[5].mxu1 }
 0x12b   : > { %v4352_v40 = vpop.f32.mrb[6].mxu1 }
 0x12c   : > { %v1781_v43 = vpop.f32.mrb[7].mxu1 }
 0x12d   : > { %v3749_v43 = vld [vmem:[%s4042_s21 + $0x3c8] ss:$24 sps:$4 sm:$0xff]  }
 0x12e   : > { %1991 = vmatmul.mubr.bf16.gmra.mrb[112].mxu1 %v3701_v39  ;;  %2441 = vmatmul.mubr.bf16.gmra.mrb[48].mxu0 %v3702_v41  ;;  %v3747_v39 = vld [vmem:[%s4042_s21 + $0x3d4] ss:$24 sps:$4 sm:$0xff]  }
 0x12f   : > { %1998 = vmatprep.mubr.bf16.mxu1 %v3703_v42  ;;  %3191 = vmatprep.mubr.msk.bf16.mxu0 %vm1637_vm0, %v3705_v44 }
 0x131   : > { %v4358_v45 = vpop.f32.mrb[8].mxu1 }
 0x132   : > { %v1786_v46 = vpop.f32.mrb[9].mxu1 }
 0x133   : > { %v4361_v48 = vpop.f32.mrb[10].mxu1  ;;  %v3750_v46 = vld [vmem:[%s4042_s21 + $0x3d0] ss:$24 sps:$4 sm:$0xff]  }
 0x134   : > { %v1789_v51 = vpop.f32.mrb[11].mxu1 }
 0x136   : > { %1999 = vmatmul.mubr.bf16.gmra.mrb[116].mxu1 %v3707_v47  ;;  %2449 = vmatmul.mubr.bf16.gmra.mrb[52].mxu0 %v3708_v49  ;;  %v3751_v47 = vld [vmem:[%s4042_s21 + $0x3fc] ss:$24 sps:$4 sm:$0xff]  }
 0x137   : > { %2006 = vmatprep.mubr.bf16.mxu1 %v3709_v50  ;;  %3192 = vmatprep.mubr.msk.bf16.mxu0 %vm1637_vm0, %v3711_v52  ;;  %v3753_v50 = vld [vmem:[%s4042_s21 + $0x404] ss:$24 sps:$4 sm:$0xff]  }
 0x139   : > { %v4367_v53 = vpop.f32.mrb[12].mxu1 }
 0x13a   : > { %v1794_v54 = vpop.f32.mrb[13].mxu1 }
 0x13b   : > { %v4370_v56 = vpop.f32.mrb[14].mxu1  ;;  %v3755_v54 = vld [vmem:[%s4042_s21 + $0x3f8] ss:$24 sps:$4 sm:$0xff]  }
 0x13c   : > { %v1797_v59 = vpop.f32.mrb[15].mxu1 }
 0x13e   : > { %2007 = vmatmul.mubr.bf16.gmra.mrb[120].mxu1 %v3713_v55  ;;  %2457 = vmatmul.mubr.bf16.gmra.mrb[56].mxu0 %v3714_v57  ;;  %v3756_v57 = vld [vmem:[%s4042_s21 + $0x400] ss:$24 sps:$4 sm:$0xff]  }
 0x13f   : > { %2014 = vmatprep.mubr.bf16.mxu1 %v3715_v58  ;;  %3193 = vmatprep.mubr.msk.bf16.mxu0 %vm1637_vm0, %v3717_v60  ;;  %v3757_v58 = vld [vmem:[%s4042_s21 + $0x42c] ss:$24 sps:$4 sm:$0xff]  }
 0x140   : > { %v3759_v60 = vld [vmem:[%s4042_s21 + $0x434] ss:$24 sps:$4 sm:$0xff]  }
 0x141   : > { %v4376_v61 = vpop.f32.mrb[16].mxu1 }
 0x142   : > { %v1802_v62 = vpop.f32.mrb[17].mxu1 }
 0x143   : > { %v4379_v0 = vpop.f32.mrb[18].mxu1 }
 0x144   : > { %v1805_v4 = vpop.f32.mrb[19].mxu1 }
 0x145   : > { %v3762_v4 = vld [vmem:[%s4042_s21 + $0x430] ss:$24 sps:$4 sm:$0xff]  }
 0x146   : > { %2015 = vmatmul.mubr.bf16.gmra.mrb[124].mxu1 %v3719_v63  ;;  %2465 = vmatmul.mubr.bf16.gmra.mrb[60].mxu0 %v3720_v2  ;;  %v3761_v2 = vld [vmem:[%s4042_s21 + $0x428] ss:$24 sps:$4 sm:$0xff]  }
 0x147   : > { %2183 = vmatprep.mubr.bf16.mxu1 %v3723_v3  ;;  %3194 = vmatprep.mubr.msk.bf16.mxu0 %vm1637_vm0, %v3724_v5  ;;  %v3763_v5 = vld [vmem:[%s4042_s21 + $0x45c] ss:$24 sps:$4 sm:$0xff]  }
 0x149   : > { %v4385_v6 = vpop.f32.mrb[20].mxu1 }
 0x14a   : > { %v1810_v7 = vpop.f32.mrb[21].mxu1 }
 0x14b   : > { %v4388_v9 = vpop.f32.mrb[22].mxu1 }
 0x14c   : > { %v1813_v12 = vpop.f32.mrb[23].mxu1 }
 0x14d   : > { %v3767_v12 = vld [vmem:[%s4042_s21 + $0x458] ss:$24 sps:$4 sm:$0xff]  }
 0x14e   : > { %2184 = vmatmul.mubr.bf16.vlgmr.msra.gmra.mrb[64].mxu1 %v3721_v8  ;;  %2473 = vmatmul.mubr.bf16.gmra.mrb[64].mxu0 %v3726_v10  ;;  %v3765_v8 = vld [vmem:[%s4042_s21 + $0x464] ss:$24 sps:$4 sm:$0xff]  }
 0x14f   : > { %2191 = vmatprep.mubr.bf16.mxu1 %v3727_v11  ;;  %3195 = vmatprep.mubr.msk.bf16.mxu0 %vm1637_vm0, %v3729_v13 }
 0x151   : > { %v4394_v14 = vpop.f32.mrb[24].mxu1 }
 0x152   : > { %v1818_v15 = vpop.f32.mrb[25].mxu1 }
 0x153   : > { %v4397_v17 = vpop.f32.mrb[26].mxu1  ;;  %v3768_v15 = vld [vmem:[%s4042_s21 + $0x460] ss:$24 sps:$4 sm:$0xff]  }
 0x154   : > { %v1821_v20 = vpop.f32.mrb[27].mxu1 }
 0x156   : > { %2192 = vmatmul.mubr.bf16.gmra.mrb[68].mxu1 %v3731_v16  ;;  %2481 = vmatmul.mubr.bf16.gmra.mrb[68].mxu0 %v3732_v18  ;;  %v3769_v16 = vld [vmem:[%s4042_s21 + $0x48c] ss:$24 sps:$4 sm:$0xff]  }
 0x157   : > { %2199 = vmatprep.mubr.bf16.mxu1 %v3733_v19  ;;  %3196 = vmatprep.mubr.msk.bf16.mxu0 %vm1637_vm0, %v3735_v21  ;;  %v3771_v19 = vld [vmem:[%s4042_s21 + $0x494] ss:$24 sps:$4 sm:$0xff]  }
 0x159   : > { %v4403_v22 = vpop.f32.mrb[28].mxu1 }
 0x15a   : > { %v1826_v23 = vpop.f32.mrb[29].mxu1 }
 0x15b   : > { %v4406_v25 = vpop.f32.mrb[30].mxu1  ;;  %v3773_v23 = vld [vmem:[%s4042_s21 + $0x488] ss:$24 sps:$4 sm:$0xff]  }
 0x15c   : > { %v1829_v27 = vpop.f32.mrb[31].mxu1 }
 0x15e   : > { %2200 = vmatmul.mubr.bf16.gmra.mrb[72].mxu1 %v3737_v24  ;;  %2489 = vmatmul.mubr.bf16.gmra.mrb[72].mxu0 %v3738_v1  ;;  %v3774_v1 = vld [vmem:[%s4042_s21 + $0x490] ss:$24 sps:$4 sm:$0xff]  }
 0x15f   : > { %2207 = vmatprep.mubr.bf16.mxu1 %v3739_v26  ;;  %3197 = vmatprep.mubr.msk.bf16.mxu0 %vm1637_vm0, %v3741_v28  ;;  %v3775_v26 = vld [vmem:[%s4042_s21 + $0x4bc] ss:$24 sps:$4 sm:$0xff]  }
 0x160   : > { %v3777_v28 = vld [vmem:[%s4042_s21 + $0x4c4] ss:$24 sps:$4 sm:$0xff]  }
 0x161   : > { %v4412_v30 = vpop.f32.mrb[32].mxu1 }
 0x162   : > { %v1834_v31 = vpop.f32.mrb[33].mxu1 }
 0x163   : > { %v4415_v34 = vpop.f32.mrb[34].mxu1 }
 0x164   : > { %v1837_v38 = vpop.f32.mrb[35].mxu1 }
 0x165   : > { %v3780_v38 = vld [vmem:[%s4042_s21 + $0x4c0] ss:$24 sps:$4 sm:$0xff]  }
 0x166   : > { %2208 = vmatmul.mubr.bf16.gmra.mrb[76].mxu1 %v3743_v33  ;;  %2497 = vmatmul.mubr.bf16.gmra.mrb[76].mxu0 %v3744_v35  ;;  %v3779_v35 = vld [vmem:[%s4042_s21 + $0x4b8] ss:$24 sps:$4 sm:$0xff]  }
 0x167   : > { %2215 = vmatprep.mubr.bf16.mxu1 %v3745_v36  ;;  %3198 = vmatprep.mubr.msk.bf16.mxu0 %vm1637_vm0, %v3747_v39  ;;  %v3781_v39 = vld [vmem:[%s4042_s21 + $0x4ec] ss:$24 sps:$4 sm:$0xff]  }
 0x169   : > { %v4421_v41 = vpop.f32.mrb[36].mxu1 }
 0x16a   : > { %v1842_v42 = vpop.f32.mrb[37].mxu1 }
 0x16b   : > { %v4424_v44 = vpop.f32.mrb[38].mxu1 }
 0x16c   : > { %v1845_v49 = vpop.f32.mrb[39].mxu1 }
 0x16d   : > { %v3785_v49 = vld [vmem:[%s4042_s21 + $0x4e8] ss:$24 sps:$4 sm:$0xff]  }
 0x16e   : > { %2216 = vmatmul.mubr.bf16.gmra.mrb[80].mxu1 %v3749_v43  ;;  %2505 = vmatmul.mubr.bf16.gmra.mrb[80].mxu0 %v3750_v46  ;;  %v3783_v43 = vld [vmem:[%s4042_s21 + $0x4f4] ss:$24 sps:$4 sm:$0xff]  }
 0x16f   : > { %2223 = vmatprep.mubr.bf16.mxu1 %v3751_v47  ;;  %3199 = vmatprep.mubr.msk.bf16.mxu0 %vm1637_vm0, %v3753_v50 }
 0x171   : > { %v4430_v51 = vpop.f32.mrb[40].mxu1 }
 0x172   : > { %v1850_v52 = vpop.f32.mrb[41].mxu1 }
 0x173   : > { %v4433_v55 = vpop.f32.mrb[42].mxu1  ;;  %v3786_v52 = vld [vmem:[%s4042_s21 + $0x4f0] ss:$24 sps:$4 sm:$0xff]  }
 0x174   : > { %v1853_v59 = vpop.f32.mrb[43].mxu1 }
 0x176   : > { %2224 = vmatmul.mubr.bf16.gmra.mrb[84].mxu1 %v3755_v54  ;;  %2513 = vmatmul.mubr.bf16.gmra.mrb[84].mxu0 %v3756_v57  ;;  %v3787_v54 = vld [vmem:[%s4042_s21 + $0x51c] ss:$24 sps:$4 sm:$0xff]  }
 0x177   : > { %2231 = vmatprep.mubr.bf16.mxu1 %v3757_v58  ;;  %3200 = vmatprep.mubr.msk.bf16.mxu0 %vm1637_vm0, %v3759_v60  ;;  %v3789_v58 = vld [vmem:[%s4042_s21 + $0x524] ss:$24 sps:$4 sm:$0xff]   ;;  %v3791_v60 = vld [vmem:[%s4042_s21 + $0x518] ss:$24 sps:$4 sm:$0xff]  }
 0x179   : > { %v4439_v62 = vpop.f32.mrb[44].mxu1 }
 0x17a   : > { %v1858_v63 = vpop.f32.mrb[45].mxu1 }
 0x17b   : > { %v4442_v3 = vpop.f32.mrb[46].mxu1 }
 0x17c   : > { %v1861_v7 = vpop.f32.mrb[47].mxu1 }
 0x17e   : > { %2232 = vmatmul.mubr.bf16.gmra.mrb[88].mxu1 %v3761_v2  ;;  %2521 = vmatmul.mubr.bf16.gmra.mrb[88].mxu0 %v3762_v4  ;;  %v3792_v4 = vld [vmem:[%s4042_s21 + $0x520] ss:$24 sps:$4 sm:$0xff]  }
 0x17f   : > { %2239 = vmatprep.mubr.bf16.mxu1 %v3763_v5  ;;  %3201 = vmatprep.mubr.msk.bf16.mxu0 %vm1637_vm0, %v3765_v8  ;;  %v3793_v5 = vld [vmem:[%s4042_s21 + $0x54c] ss:$24 sps:$4 sm:$0xff]  }
 0x180   : > { %v3795_v8 = vld [vmem:[%s4042_s21 + $0x554] ss:$24 sps:$4 sm:$0xff]  }
 0x181   : > { %v4448_v10 = vpop.f32.mrb[48].mxu1 }
 0x182   : > { %v1866_v11 = vpop.f32.mrb[49].mxu1 }
 0x183   : > { %v4451_v13 = vpop.f32.mrb[50].mxu1 }
 0x184   : > { %v1869_v18 = vpop.f32.mrb[51].mxu1 }
 0x186   : > { %2240 = vmatmul.mubr.bf16.gmra.mrb[92].mxu1 %v3767_v12  ;;  %2529 = vmatmul.mubr.bf16.gmra.mrb[92].mxu0 %v3768_v15 }
 0x187   : > { %2247 = vmatprep.mubr.bf16.mxu1 %v3769_v16  ;;  %3202 = vmatprep.mubr.msk.bf16.mxu0 %vm1637_vm0, %v3771_v19  ;;  %v3797_v19 = vld [vmem:[%s4042_s21 + $0x548] ss:$24 sps:$4 sm:$0xff]  }
 0x189   : > { %v4457_v20 = vpop.f32.mrb[52].mxu1 }
 0x18a   : > { %v1874_v21 = vpop.f32.mrb[53].mxu1 }
 0x18b   : > { %v4460_v24 = vpop.f32.mrb[54].mxu1 }
 0x18c   : > { %v1877_v27 = vpop.f32.mrb[55].mxu1 }
 0x18e   : > { %2248 = vmatmul.mubr.bf16.gmra.mrb[96].mxu1 %v3773_v23  ;;  %2537 = vmatmul.mubr.bf16.gmra.mrb[96].mxu0 %v3774_v1  ;;  %v3798_v1 = vld [vmem:[%s4042_s21 + $0x550] ss:$24 sps:$4 sm:$0xff]  }
 0x18f   : > { %2255 = vmatprep.mubr.bf16.mxu1 %v3775_v26  ;;  %3203 = vmatprep.mubr.msk.bf16.mxu0 %vm1637_vm0, %v3777_v28  ;;  %v3799_v26 = vld [vmem:[%s4042_s21 + $0x57c] ss:$24 sps:$4 sm:$0xff]  }
 0x190   : > { %v3801_v28 = vld [vmem:[%s4042_s21 + $0x584] ss:$24 sps:$4 sm:$0xff]  }
 0x191   : > { %v4466_v31 = vpop.f32.mrb[56].mxu1 }
 0x192   : > { %v1882_v33 = vpop.f32.mrb[57].mxu1 }
 0x193   : > { %v4469_v36 = vpop.f32.mrb[58].mxu1 }
 0x194   : > { %v1885_v42 = vpop.f32.mrb[59].mxu1 }
 0x196   : > { %2256 = vmatmul.mubr.bf16.gmra.mrb[100].mxu1 %v3779_v35  ;;  %2545 = vmatmul.mubr.bf16.gmra.mrb[100].mxu0 %v3780_v38 }
 0x197   : > { %2263 = vmatprep.mubr.bf16.mxu1 %v3781_v39  ;;  %3204 = vmatprep.mubr.msk.bf16.mxu0 %vm1637_vm0, %v3783_v43 }
 0x199   : > { %v4475_v46 = vpop.f32.mrb[60].mxu1 }
 0x19a   : > { %v1890_v47 = vpop.f32.mrb[61].mxu1 }
 0x19b   : > { %v4478_v50 = vpop.f32.mrb[62].mxu1  ;;  %v3803_v47 = vld [vmem:[%s4042_s21 + $0x578] ss:$24 sps:$4 sm:$0xff]  }
 0x19c   : > { %v1893_v57 = vpop.f32.mrb[63].mxu1 }
 0x19e   : > { %2264 = vmatmul.mubr.bf16.gmra.mrb[104].mxu1 %v3785_v49  ;;  %2553 = vmatmul.mubr.bf16.gmra.mrb[104].mxu0 %v3786_v52  ;;  %v3804_v52 = vld [vmem:[%s4042_s21 + $0x580] ss:$24 sps:$4 sm:$0xff]  }
 0x19f   : > { %2271 = vmatprep.mubr.bf16.mxu1 %v3787_v54  ;;  %3205 = vmatprep.mubr.msk.bf16.mxu0 %vm1637_vm0, %v3789_v58  ;;  %v3805_v54 = vld [vmem:[%s4042_s21 + $0x5ac] ss:$24 sps:$4 sm:$0xff]  }
 0x1a0   : > { %v3807_v58 = vld [vmem:[%s4042_s21 + $0x5b4] ss:$24 sps:$4 sm:$0xff]  }
 0x1a1   : > { %v2346_v59 = vpop.f32.mrb[0].mxu0 }
 0x1a2   : > { %v3248_v63 = vadd.f32 %v2346_v59, %v4340_v29  ;;  %v2348_v2 = vpop.f32.mrb[1].mxu0 }
 0x1a3   : > { %v2349_v7 = vpop.f32.mrb[2].mxu0 }
 0x1a4   : > { %vm2601_vm1 = vcmp.ge.f32.partialorder %v3248_v63, 0.0  ;;  %v2665_v11 = vmul.f32 0.2, %v3248_v63  ;;  %v3249_v12 = vadd.f32 %v2349_v7, %v4343_v32  ;;  %v2351_v15 = vpop.f32.mrb[3].mxu0  ;;  %v3809_v7 = vld [vmem:[%s4042_s21 + $0x5a8] ss:$24 sps:$4 sm:$0xff]  }
 0x1a6   : > { %2272 = vmatmul.mubr.bf16.gmra.mrb[108].mxu1 %v3791_v60  ;;  %v2729_v16 = vsel %vm2601_vm1, %v3248_v63, %v2665_v11  ;;  %vm2602_vm2 = vcmp.ge.f32.partialorder %v3249_v12, 0.0  ;;  %v2666_v18 = vmul.f32 0.2, %v3249_v12  ;;  %2561 = vmatmul.mubr.bf16.gmra.mrb[108].mxu0 %v3792_v4  ;;  %v3810_v11 = vld [vmem:[%s4042_s21 + $0x5b0] ss:$24 sps:$4 sm:$0xff]  }
 0x1a7   : > { %2279 = vmatprep.mubr.bf16.mxu1 %v3793_v5  ;;  %2793 = vst [vmem:[%s4493_s28] sm:$0xff] %v2729_v16  ;;  %3206 = vmatprep.mubr.msk.bf16.mxu0 %vm1637_vm0, %v3795_v8  ;;  %v3813_v16 = vld [vmem:[%s4042_s21 + $0x5e4] ss:$24 sps:$4 sm:$0xff]  }
 0x1a8   : > { %v2730_v29 = vsel %vm2602_vm2, %v3249_v12, %v2666_v18  ;;  %v3811_v12 = vld [vmem:[%s4042_s21 + $0x5dc] ss:$24 sps:$4 sm:$0xff]  }
 0x1a9   : > { %2794 = vst [vmem:[%s4493_s28 + $0x8] sm:$0xff] %v2730_v29  ;;  %v2354_v32 = vpop.f32.mrb[4].mxu0 }
 0x1aa   : > { %v3250_v21 = vadd.f32 %v2354_v32, %v4349_v37  ;;  %v2356_v23 = vpop.f32.mrb[5].mxu0 }
 0x1ab   : > { %v2357_v27 = vpop.f32.mrb[6].mxu0 }
 0x1ac   : > { %vm2603_vm3 = vcmp.ge.f32.partialorder %v3250_v21, 0.0  ;;  %v2667_v33 = vmul.f32 0.2, %v3250_v21  ;;  %v3251_v35 = vadd.f32 %v2357_v27, %v4352_v40  ;;  %v2359_v38 = vpop.f32.mrb[7].mxu0  ;;  %v3816_v27 = vld [vmem:[%s4042_s21 + $0x5e0] ss:$24 sps:$4 sm:$0xff]  }
 0x1ae   : > { %2280 = vmatmul.mubr.bf16.gmra.mrb[112].mxu1 %v3797_v19  ;;  %v2731_v39 = vsel %vm2603_vm3, %v3250_v21, %v2667_v33  ;;  %vm2604_vm4 = vcmp.ge.f32.partialorder %v3251_v35, 0.0  ;;  %v2668_v37 = vmul.f32 0.2, %v3251_v35  ;;  %2569 = vmatmul.mubr.bf16.gmra.mrb[112].mxu0 %v3798_v1  ;;  %v3815_v1 = vld [vmem:[%s4042_s21 + $0x5d8] ss:$24 sps:$4 sm:$0xff]   ;;  %s3215_s21 = sshll.u32 %s3921_s13, 13 }
 0x1af   : > { %2287 = vmatprep.mubr.bf16.mxu1 %v3799_v26  ;;  %2795 = vst [vmem:[%s4493_s28 + $0x10] sm:$0xff] %v2731_v39  ;;  %3207 = vmatprep.mubr.msk.bf16.mxu0 %vm1637_vm0, %v3801_v28  ;;  %s4610_s4 = scalar_lea.hbm %s4661_s2, %s3215_s21  ;;  %s4618_s13 = scalar_lea.sflag [#allocation3], %s137_s26 }
 0x1b0   : > { %v2732_v42 = vsel %vm2604_vm4, %v3251_v35, %v2668_v37 }
 0x1b1   : > { %2796 = vst [vmem:[%s4493_s28 + $0x18] sm:$0xff] %v2732_v42  ;;  %v2362_v43 = vpop.f32.mrb[8].mxu0 }
 0x1b2   : > { %v3252_v49 = vadd.f32 %v2362_v43, %v4358_v45  ;;  %v2364_v40 = vpop.f32.mrb[9].mxu0 }
 0x1b3   : > { %v2365_v57 = vpop.f32.mrb[10].mxu0 }
 0x1b4   : > { %vm2605_vm5 = vcmp.ge.f32.partialorder %v3252_v49, 0.0  ;;  %v2669_v59 = vmul.f32 0.2, %v3252_v49  ;;  %v3253_v60 = vadd.f32 %v2365_v57, %v4361_v48  ;;  %v2367_v63 = vpop.f32.mrb[11].mxu0 }
 0x1b6   : > { %2288 = vmatmul.mubr.bf16.gmra.mrb[116].mxu1 %v3803_v47  ;;  %v2733_v2 = vsel %vm2605_vm5, %v3252_v49, %v2669_v59  ;;  %vm2606_vm6 = vcmp.ge.f32.partialorder %v3253_v60, 0.0  ;;  %v2670_v45 = vmul.f32 0.2, %v3253_v60  ;;  %2577 = vmatmul.mubr.bf16.gmra.mrb[116].mxu0 %v3804_v52 }
 0x1b7   : > { %2295 = vmatprep.mubr.bf16.mxu1 %v3805_v54  ;;  %2797 = vst [vmem:[%s4493_s28 + $0x20] sm:$0xff] %v2733_v2  ;;  %3208 = vmatprep.mubr.msk.bf16.mxu0 %vm1637_vm0, %v3807_v58 }
 0x1b8   : > { %v2734_v4 = vsel %vm2606_vm6, %v3253_v60, %v2670_v45 }
 0x1b9   : > { %2798 = vst [vmem:[%s4493_s28 + $0x28] sm:$0xff] %v2734_v4  ;;  %v2370_v5 = vpop.f32.mrb[12].mxu0 }
 0x1ba   : > { %v3254_v8 = vadd.f32 %v2370_v5, %v4367_v53  ;;  %v2372_v48 = vpop.f32.mrb[13].mxu0 }
 0x1bb   : > { %v2373_v15 = vpop.f32.mrb[14].mxu0 }
 0x1bc   : > { %vm2607_vm7 = vcmp.ge.f32.partialorder %v3254_v8, 0.0  ;;  %v2671_v18 = vmul.f32 0.2, %v3254_v8  ;;  %v3255_v29 = vadd.f32 %v2373_v15, %v4370_v56  ;;  %v2375_v32 = vpop.f32.mrb[15].mxu0 }
 0x1be   : > { %2296 = vmatmul.mubr.bf16.gmra.mrb[120].mxu1 %v3809_v7  ;;  %v2735_v19 = vsel %vm2607_vm7, %v3254_v8, %v2671_v18  ;;  %vm2608_vm8 = vcmp.ge.f32.partialorder %v3255_v29, 0.0  ;;  %v2672_v21 = vmul.f32 0.2, %v3255_v29  ;;  %2585 = vmatmul.mubr.bf16.gmra.mrb[120].mxu0 %v3810_v11 }
 0x1bf   : > { %2303 = vmatprep.mubr.bf16.mxu1 %v3811_v12  ;;  %2799 = vst [vmem:[%s4493_s28 + $0x30] sm:$0xff] %v2735_v19  ;;  %3209 = vmatprep.mubr.msk.bf16.mxu0 %vm1637_vm0, %v3813_v16 }
 0x1c0   : > { %v2736_v53 = vsel %vm2608_vm8, %v3255_v29, %v2672_v21 }
 0x1c1   : > { %2800 = vst [vmem:[%s4493_s28 + $0x38] sm:$0xff] %v2736_v53  ;;  %v2378_v23 = vpop.f32.mrb[16].mxu0 }
 0x1c2   : > { %v3256_v26 = vadd.f32 %v2378_v23, %v4376_v61  ;;  %v2380_v56 = vpop.f32.mrb[17].mxu0 }
 0x1c3   : > { %v2381_v28 = vpop.f32.mrb[18].mxu0 }
 0x1c4   : > { %vm2609_vm9 = vcmp.ge.f32.partialorder %v3256_v26, 0.0  ;;  %v2673_v33 = vmul.f32 0.2, %v3256_v26  ;;  %v3257_v35 = vadd.f32 %v2381_v28, %v4379_v0  ;;  %v2383_v38 = vpop.f32.mrb[19].mxu0 }
 0x1c6   : > { %2304 = vmatmul.mubr.bf16.gmra.mrb[124].mxu1 %v3815_v1  ;;  %v2737_v39 = vsel %vm2609_vm9, %v3256_v26, %v2673_v33  ;;  %vm2610_vm10 = vcmp.ge.f32.partialorder %v3257_v35, 0.0  ;;  %v2674_v37 = vmul.f32 0.2, %v3257_v35  ;;  %2593 = vmatmul.mubr.bf16.gmra.mrb[124].mxu0 %v3816_v27 }
 0x1c7   : > { %2801 = vst [vmem:[%s4493_s28 + $0x40] sm:$0xff] %v2737_v39 }
 0x1c8   : > { %v2738_v42 = vsel %vm2610_vm10, %v3257_v35, %v2674_v37 }
 0x1c9   : > { %2802 = vst [vmem:[%s4493_s28 + $0x48] sm:$0xff] %v2738_v42  ;;  %v2386_v43 = vpop.f32.mrb[20].mxu0 }
 0x1ca   : > { %v3258_v61 = vadd.f32 %v2386_v43, %v4385_v6  ;;  %v2388_v47 = vpop.f32.mrb[21].mxu0 }
 0x1cb   : > { %v2389_v49 = vpop.f32.mrb[22].mxu0 }
 0x1cc   : > { %vm2611_vm11 = vcmp.ge.f32.partialorder %v3258_v61, 0.0  ;;  %v2675_v40 = vmul.f32 0.2, %v3258_v61  ;;  %v3259_v0 = vadd.f32 %v2389_v49, %v4388_v9  ;;  %v2391_v52 = vpop.f32.mrb[23].mxu0 }
 0x1ce   : > { %v2739_v54 = vsel %vm2611_vm11, %v3258_v61, %v2675_v40  ;;  %vm2612_vm12 = vcmp.ge.f32.partialorder %v3259_v0, 0.0  ;;  %v2676_v57 = vmul.f32 0.2, %v3259_v0 }
 0x1cf   : > { %2803 = vst [vmem:[%s4493_s28 + $0x50] sm:$0xff] %v2739_v54 }
 0x1d0   : > { %v2740_v58 = vsel %vm2612_vm12, %v3259_v0, %v2676_v57 }
 0x1d1   : > { %2804 = vst [vmem:[%s4493_s28 + $0x58] sm:$0xff] %v2740_v58  ;;  %v2394_v59 = vpop.f32.mrb[24].mxu0 }
 0x1d2   : > { %v3260_v60 = vadd.f32 %v2394_v59, %v4394_v14  ;;  %v2396_v63 = vpop.f32.mrb[25].mxu0 }
 0x1d3   : > { %v2397_v6 = vpop.f32.mrb[26].mxu0 }
 0x1d4   : > { %vm2613_vm13 = vcmp.ge.f32.partialorder %v3260_v60, 0.0  ;;  %v2677_v2 = vmul.f32 0.2, %v3260_v60  ;;  %v3261_v45 = vadd.f32 %v2397_v6, %v4397_v17  ;;  %v2399_v4 = vpop.f32.mrb[27].mxu0 }
 0x1d6   : > { %v2741_v9 = vsel %vm2613_vm13, %v3260_v60, %v2677_v2  ;;  %vm2614_vm14 = vcmp.ge.f32.partialorder %v3261_v45, 0.0  ;;  %v2678_v5 = vmul.f32 0.2, %v3261_v45 }
 0x1d7   : > { %2805 = vst [vmem:[%s4493_s28 + $0x60] sm:$0xff] %v2741_v9 }
 0x1d8   : > { %v2742_v7 = vsel %vm2614_vm14, %v3261_v45, %v2678_v5 }
 0x1d9   : > { %2806 = vst [vmem:[%s4493_s28 + $0x68] sm:$0xff] %v2742_v7  ;;  %v2402_v8 = vpop.f32.mrb[28].mxu0 }
 0x1da   : > { %v3262_v48 = vadd.f32 %v2402_v8, %v4403_v22  ;;  %v2404_v11 = vpop.f32.mrb[29].mxu0 }
 0x1db   : > { %v2405_v14 = vpop.f32.mrb[30].mxu0 }
 0x1dc   : > { %vm2615_vm15 = vcmp.ge.f32.partialorder %v3262_v48, 0.0  ;;  %v2679_v12 = vmul.f32 0.2, %v3262_v48  ;;  %v3263_v15 = vadd.f32 %v2405_v14, %v4406_v25  ;;  %v2407_v16 = vpop.f32.mrb[31].mxu0 }
 0x1de   : > { %v2743_v17 = vsel %vm2615_vm15, %v3262_v48, %v2679_v12  ;;  %vm2616_vm0 = vcmp.ge.f32.partialorder %v3263_v15, 0.0  ;;  %v2680_v18 = vmul.f32 0.2, %v3263_v15 }
 0x1df   : > { %2807 = vst [vmem:[%s4493_s28 + $0x70] sm:$0xff] %v2743_v17 }
 0x1e0   : > { %v2744_v29 = vsel %vm2616_vm0, %v3263_v15, %v2680_v18 }
 0x1e1   : > { %2808 = vst [vmem:[%s4493_s28 + $0x78] sm:$0xff] %v2744_v29  ;;  %v2410_v32 = vpop.f32.mrb[32].mxu0 }
 0x1e2   : > { %v3264_v19 = vadd.f32 %v2410_v32, %v4412_v30  ;;  %v2412_v21 = vpop.f32.mrb[33].mxu0 }
 0x1e3   : > { %v2413_v22 = vpop.f32.mrb[34].mxu0 }
 0x1e4   : > { %vm2617_vm1 = vcmp.ge.f32.partialorder %v3264_v19, 0.0  ;;  %v2681_v53 = vmul.f32 0.2, %v3264_v19  ;;  %v3265_v23 = vadd.f32 %v2413_v22, %v4415_v34  ;;  %v2415_v1 = vpop.f32.mrb[35].mxu0 }
 0x1e6   : > { %v2745_v25 = vsel %vm2617_vm1, %v3264_v19, %v2681_v53  ;;  %vm2618_vm2 = vcmp.ge.f32.partialorder %v3265_v23, 0.0  ;;  %v2682_v26 = vmul.f32 0.2, %v3265_v23 }
 0x1e7   : > { %2809 = vst [vmem:[%s4493_s28 + $0x80] sm:$0xff] %v2745_v25 }
 0x1e8   : > { %v2746_v56 = vsel %vm2618_vm2, %v3265_v23, %v2682_v26 }
 0x1e9   : > { %2810 = vst [vmem:[%s4493_s28 + $0x88] sm:$0xff] %v2746_v56  ;;  %v2418_v27 = vpop.f32.mrb[36].mxu0 }
 0x1ea   : > { %v3266_v28 = vadd.f32 %v2418_v27, %v4421_v41  ;;  %v2420_v33 = vpop.f32.mrb[37].mxu0 }
 0x1eb   : > { %v2421_v30 = vpop.f32.mrb[38].mxu0 }
 0x1ec   : > { %vm2619_vm3 = vcmp.ge.f32.partialorder %v3266_v28, 0.0  ;;  %v2683_v35 = vmul.f32 0.2, %v3266_v28  ;;  %v3267_v38 = vadd.f32 %v2421_v30, %v4424_v44  ;;  %v2423_v39 = vpop.f32.mrb[39].mxu0 }
 0x1ee   : > { %v2747_v34 = vsel %vm2619_vm3, %v3266_v28, %v2683_v35  ;;  %vm2620_vm4 = vcmp.ge.f32.partialorder %v3267_v38, 0.0  ;;  %v2684_v37 = vmul.f32 0.2, %v3267_v38 }
 0x1ef   : > { %2811 = vst [vmem:[%s4493_s28 + $0x90] sm:$0xff] %v2747_v34 }
 0x1f0   : > { %v2748_v42 = vsel %vm2620_vm4, %v3267_v38, %v2684_v37 }
 0x1f1   : > { %2812 = vst [vmem:[%s4493_s28 + $0x98] sm:$0xff] %v2748_v42  ;;  %v2426_v43 = vpop.f32.mrb[40].mxu0 }
 0x1f2   : > { %v3268_v61 = vadd.f32 %v2426_v43, %v4430_v51  ;;  %v2428_v47 = vpop.f32.mrb[41].mxu0 }
 0x1f3   : > { %v2429_v41 = vpop.f32.mrb[42].mxu0 }
 0x1f4   : > { %vm2621_vm5 = vcmp.ge.f32.partialorder %v3268_v61, 0.0  ;;  %v2685_v49 = vmul.f32 0.2, %v3268_v61  ;;  %v3269_v40 = vadd.f32 %v2429_v41, %v4433_v55  ;;  %v2431_v0 = vpop.f32.mrb[43].mxu0 }
 0x1f6   : > { %v2749_v44 = vsel %vm2621_vm5, %v3268_v61, %v2685_v49  ;;  %vm2622_vm6 = vcmp.ge.f32.partialorder %v3269_v40, 0.0  ;;  %v2686_v52 = vmul.f32 0.2, %v3269_v40 }
 0x1f7   : > { %2813 = vst [vmem:[%s4493_s28 + $0xa0] sm:$0xff] %v2749_v44 }
 0x1f8   : > { %v2750_v54 = vsel %vm2622_vm6, %v3269_v40, %v2686_v52 }
 0x1f9   : > { %2814 = vst [vmem:[%s4493_s28 + $0xa8] sm:$0xff] %v2750_v54  ;;  %v2434_v57 = vpop.f32.mrb[44].mxu0 }
 0x1fa   : > { %v3270_v58 = vadd.f32 %v2434_v57, %v4439_v62  ;;  %v2436_v59 = vpop.f32.mrb[45].mxu0 }
 0x1fb   : > { %v2437_v51 = vpop.f32.mrb[46].mxu0 }
 0x1fc   : > { %vm2623_vm7 = vcmp.ge.f32.partialorder %v3270_v58, 0.0  ;;  %v2687_v60 = vmul.f32 0.2, %v3270_v58  ;;  %v3271_v63 = vadd.f32 %v2437_v51, %v4442_v3  ;;  %v2439_v6 = vpop.f32.mrb[47].mxu0 }
 0x1fe   : > { %v2751_v55 = vsel %vm2623_vm7, %v3270_v58, %v2687_v60  ;;  %vm2624_vm8 = vcmp.ge.f32.partialorder %v3271_v63, 0.0  ;;  %v2688_v2 = vmul.f32 0.2, %v3271_v63 }
 0x1ff   : > { %2815 = vst [vmem:[%s4493_s28 + $0xb0] sm:$0xff] %v2751_v55 }
 0x200   : > { %v2752_v45 = vsel %vm2624_vm8, %v3271_v63, %v2688_v2 }
 0x201   : > { %2816 = vst [vmem:[%s4493_s28 + $0xb8] sm:$0xff] %v2752_v45  ;;  %v2442_v4 = vpop.f32.mrb[48].mxu0 }
 0x202   : > { %v3272_v9 = vadd.f32 %v2442_v4, %v4448_v10  ;;  %v2444_v5 = vpop.f32.mrb[49].mxu0 }
 0x203   : > { %v2445_v62 = vpop.f32.mrb[50].mxu0 }
 0x204   : > { %vm2625_vm9 = vcmp.ge.f32.partialorder %v3272_v9, 0.0  ;;  %v2689_v7 = vmul.f32 0.2, %v3272_v9  ;;  %v3273_v8 = vadd.f32 %v2445_v62, %v4451_v13  ;;  %v2447_v48 = vpop.f32.mrb[51].mxu0 }
 0x206   : > { %v2753_v3 = vsel %vm2625_vm9, %v3272_v9, %v2689_v7  ;;  %vm2626_vm10 = vcmp.ge.f32.partialorder %v3273_v8, 0.0  ;;  %v2690_v11 = vmul.f32 0.2, %v3273_v8 }
 0x207   : > { %2817 = vst [vmem:[%s4493_s28 + $0xc0] sm:$0xff] %v2753_v3 }
 0x208   : > { %v2754_v14 = vsel %vm2626_vm10, %v3273_v8, %v2690_v11 }
 0x209   : > { %2818 = vst [vmem:[%s4493_s28 + $0xc8] sm:$0xff] %v2754_v14  ;;  %v2450_v12 = vpop.f32.mrb[52].mxu0 }
 0x20a   : > { %v3274_v15 = vadd.f32 %v2450_v12, %v4457_v20  ;;  %v2452_v16 = vpop.f32.mrb[53].mxu0 }
 0x20b   : > { %v2453_v10 = vpop.f32.mrb[54].mxu0 }
 0x20c   : > { %vm2627_vm11 = vcmp.ge.f32.partialorder %v3274_v15, 0.0  ;;  %v2691_v17 = vmul.f32 0.2, %v3274_v15  ;;  %v3275_v18 = vadd.f32 %v2453_v10, %v4460_v24  ;;  %v2455_v29 = vpop.f32.mrb[55].mxu0 }
 0x20e   : > { %v2755_v13 = vsel %vm2627_vm11, %v3274_v15, %v2691_v17  ;;  %vm2628_vm12 = vcmp.ge.f32.partialorder %v3275_v18, 0.0  ;;  %v2692_v32 = vmul.f32 0.2, %v3275_v18 }
 0x20f   : > { %2819 = vst [vmem:[%s4493_s28 + $0xd0] sm:$0xff] %v2755_v13 }
 0x210   : > { %v2756_v19 = vsel %vm2628_vm12, %v3275_v18, %v2692_v32 }
 0x211   : > { %2820 = vst [vmem:[%s4493_s28 + $0xd8] sm:$0xff] %v2756_v19  ;;  %v2458_v21 = vpop.f32.mrb[56].mxu0 }
 0x212   : > { %v3276_v22 = vadd.f32 %v2458_v21, %v4466_v31  ;;  %v2460_v53 = vpop.f32.mrb[57].mxu0 }
 0x213   : > { %v2461_v20 = vpop.f32.mrb[58].mxu0 }
 0x214   : > { %vm2629_vm13 = vcmp.ge.f32.partialorder %v3276_v22, 0.0  ;;  %v2693_v23 = vmul.f32 0.2, %v3276_v22  ;;  %v3277_v1 = vadd.f32 %v2461_v20, %v4469_v36  ;;  %v2463_v25 = vpop.f32.mrb[59].mxu0 }
 0x216   : > { %v2757_v24 = vsel %vm2629_vm13, %v3276_v22, %v2693_v23  ;;  %vm2630_vm14 = vcmp.ge.f32.partialorder %v3277_v1, 0.0  ;;  %v2694_v26 = vmul.f32 0.2, %v3277_v1 }
 0x217   : > { %2821 = vst [vmem:[%s4493_s28 + $0xe0] sm:$0xff] %v2757_v24 }
 0x218   : > { %v2758_v56 = vsel %vm2630_vm14, %v3277_v1, %v2694_v26 }
 0x219   : > { %2822 = vst [vmem:[%s4493_s28 + $0xe8] sm:$0xff] %v2758_v56  ;;  %v2466_v27 = vpop.f32.mrb[60].mxu0 }
 0x21a   : > { %v3278_v28 = vadd.f32 %v2466_v27, %v4475_v46  ;;  %v2468_v33 = vpop.f32.mrb[61].mxu0 }
 0x21b   : > { %v2469_v31 = vpop.f32.mrb[62].mxu0 }
 0x21c   : > { %vm2631_vm15 = vcmp.ge.f32.partialorder %v3278_v28, 0.0  ;;  %v2695_v30 = vmul.f32 0.2, %v3278_v28  ;;  %v3279_v35 = vadd.f32 %v2469_v31, %v4478_v50  ;;  %v2471_v38 = vpop.f32.mrb[63].mxu0 }
 0x21e   : > { %v2759_v36 = vsel %vm2631_vm15, %v3278_v28, %v2695_v30  ;;  %vm2632_vm0 = vcmp.ge.f32.partialorder %v3279_v35, 0.0  ;;  %v2696_v39 = vmul.f32 0.2, %v3279_v35 }
 0x21f   : > { %2823 = vst [vmem:[%s4493_s28 + $0xf0] sm:$0xff] %v2759_v36 }
 0x220   : > { %v2760_v34 = vsel %vm2632_vm0, %v3279_v35, %v2696_v39 }
 0x221   : > { %v2185_v37 = vpop.f32.mrb[64].mxu1  ;;  %2824 = vst [vmem:[%s4493_s28 + $0xf8] sm:$0xff] %v2760_v34  ;;  %v2474_v42 = vpop.f32.mrb[64].mxu0 }
 0x222   : > { %v2187_v43 = vpop.f32.mrb[65].mxu1  ;;  %v3280_v61 = vadd.f32 %v2474_v42, %v2185_v37  ;;  %v2476_v46 = vpop.f32.mrb[65].mxu0 }
 0x223   : > { %v2188_v47 = vpop.f32.mrb[66].mxu1  ;;  %v2477_v41 = vpop.f32.mrb[66].mxu0 }
 0x224   : > { %v2190_v49 = vpop.f32.mrb[67].mxu1  ;;  %vm2633_vm1 = vcmp.ge.f32.partialorder %v3280_v61, 0.0  ;;  %v2697_v40 = vmul.f32 0.2, %v3280_v61  ;;  %v3281_v50 = vadd.f32 %v2477_v41, %v2188_v47  ;;  %v2479_v0 = vpop.f32.mrb[67].mxu0 }
 0x226   : > { %v2761_v44 = vsel %vm2633_vm1, %v3280_v61, %v2697_v40  ;;  %vm2634_vm2 = vcmp.ge.f32.partialorder %v3281_v50, 0.0  ;;  %v2698_v52 = vmul.f32 0.2, %v3281_v50 }
 0x227   : > { %2825 = vst [vmem:[%s4493_s28 + $0x100] sm:$0xff] %v2761_v44 }
 0x228   : > { %v2762_v54 = vsel %vm2634_vm2, %v3281_v50, %v2698_v52 }
 0x229   : > { %v2193_v57 = vpop.f32.mrb[68].mxu1  ;;  %2826 = vst [vmem:[%s4493_s28 + $0x108] sm:$0xff] %v2762_v54  ;;  %v2482_v58 = vpop.f32.mrb[68].mxu0 }
 0x22a   : > { %v2195_v59 = vpop.f32.mrb[69].mxu1  ;;  %v3282_v51 = vadd.f32 %v2482_v58, %v2193_v57  ;;  %v2484_v60 = vpop.f32.mrb[69].mxu0 }
 0x22b   : > { %v2196_v63 = vpop.f32.mrb[70].mxu1  ;;  %v2485_v6 = vpop.f32.mrb[70].mxu0 }
 0x22c   : > { %v2198_v55 = vpop.f32.mrb[71].mxu1  ;;  %vm2635_vm3 = vcmp.ge.f32.partialorder %v3282_v51, 0.0  ;;  %v2699_v2 = vmul.f32 0.2, %v3282_v51  ;;  %v3283_v45 = vadd.f32 %v2485_v6, %v2196_v63  ;;  %v2487_v4 = vpop.f32.mrb[71].mxu0 }
 0x22e   : > { %v2763_v9 = vsel %vm2635_vm3, %v3282_v51, %v2699_v2  ;;  %vm2636_vm4 = vcmp.ge.f32.partialorder %v3283_v45, 0.0  ;;  %v2700_v5 = vmul.f32 0.2, %v3283_v45 }
 0x22f   : > { %2827 = vst [vmem:[%s4493_s28 + $0x110] sm:$0xff] %v2763_v9 }
 0x230   : > { %v2764_v62 = vsel %vm2636_vm4, %v3283_v45, %v2700_v5 }
 0x231   : > { %v2201_v7 = vpop.f32.mrb[72].mxu1  ;;  %2828 = vst [vmem:[%s4493_s28 + $0x118] sm:$0xff] %v2764_v62  ;;  %v2490_v8 = vpop.f32.mrb[72].mxu0 }
 0x232   : > { %v2203_v48 = vpop.f32.mrb[73].mxu1  ;;  %v3284_v3 = vadd.f32 %v2490_v8, %v2201_v7  ;;  %v2492_v11 = vpop.f32.mrb[73].mxu0 }
 0x233   : > { %v2204_v14 = vpop.f32.mrb[74].mxu1  ;;  %v2493_v12 = vpop.f32.mrb[74].mxu0 }
 0x234   : > { %v2206_v15 = vpop.f32.mrb[75].mxu1  ;;  %vm2637_vm5 = vcmp.ge.f32.partialorder %v3284_v3, 0.0  ;;  %v2701_v16 = vmul.f32 0.2, %v3284_v3  ;;  %v3285_v10 = vadd.f32 %v2493_v12, %v2204_v14  ;;  %v2495_v17 = vpop.f32.mrb[75].mxu0 }
 0x236   : > { %v2765_v18 = vsel %vm2637_vm5, %v3284_v3, %v2701_v16  ;;  %vm2638_vm6 = vcmp.ge.f32.partialorder %v3285_v10, 0.0  ;;  %v2702_v29 = vmul.f32 0.2, %v3285_v10 }
 0x237   : > { %2829 = vst [vmem:[%s4493_s28 + $0x120] sm:$0xff] %v2765_v18 }
 0x238   : > { %v2766_v13 = vsel %vm2638_vm6, %v3285_v10, %v2702_v29 }
 0x239   : > { %v2209_v32 = vpop.f32.mrb[76].mxu1  ;;  %2830 = vst [vmem:[%s4493_s28 + $0x128] sm:$0xff] %v2766_v13  ;;  %v2498_v19 = vpop.f32.mrb[76].mxu0 }
 0x23a   : > { %v2211_v21 = vpop.f32.mrb[77].mxu1  ;;  %v3286_v22 = vadd.f32 %v2498_v19, %v2209_v32  ;;  %v2500_v53 = vpop.f32.mrb[77].mxu0 }
 0x23b   : > { %v2212_v20 = vpop.f32.mrb[78].mxu1  ;;  %v2501_v23 = vpop.f32.mrb[78].mxu0 }
 0x23c   : > { %v2214_v1 = vpop.f32.mrb[79].mxu1  ;;  %vm2639_vm7 = vcmp.ge.f32.partialorder %v3286_v22, 0.0  ;;  %v2703_v25 = vmul.f32 0.2, %v3286_v22  ;;  %v3287_v24 = vadd.f32 %v2501_v23, %v2212_v20  ;;  %v2503_v26 = vpop.f32.mrb[79].mxu0 }
 0x23e   : > { %v2767_v56 = vsel %vm2639_vm7, %v3286_v22, %v2703_v25  ;;  %vm2640_vm8 = vcmp.ge.f32.partialorder %v3287_v24, 0.0  ;;  %v2704_v27 = vmul.f32 0.2, %v3287_v24 }
 0x23f   : > { %2831 = vst [vmem:[%s4493_s28 + $0x130] sm:$0xff] %v2767_v56 }
 0x240   : > { %v2768_v28 = vsel %vm2640_vm8, %v3287_v24, %v2704_v27 }
 0x241   : > { %v2217_v33 = vpop.f32.mrb[80].mxu1  ;;  %2832 = vst [vmem:[%s4493_s28 + $0x138] sm:$0xff] %v2768_v28  ;;  %v2506_v31 = vpop.f32.mrb[80].mxu0 }
 0x242   : > { %v2219_v30 = vpop.f32.mrb[81].mxu1  ;;  %v3288_v35 = vadd.f32 %v2506_v31, %v2217_v33  ;;  %v2508_v38 = vpop.f32.mrb[81].mxu0 }
 0x243   : > { %v2220_v36 = vpop.f32.mrb[82].mxu1  ;;  %v2509_v39 = vpop.f32.mrb[82].mxu0 }
 0x244   : > { %v2222_v34 = vpop.f32.mrb[83].mxu1  ;;  %vm2641_vm9 = vcmp.ge.f32.partialorder %v3288_v35, 0.0  ;;  %v2705_v37 = vmul.f32 0.2, %v3288_v35  ;;  %v3289_v42 = vadd.f32 %v2509_v39, %v2220_v36  ;;  %v2511_v43 = vpop.f32.mrb[83].mxu0 }
 0x246   : > { %v2769_v61 = vsel %vm2641_vm9, %v3288_v35, %v2705_v37  ;;  %vm2642_vm10 = vcmp.ge.f32.partialorder %v3289_v42, 0.0  ;;  %v2706_v46 = vmul.f32 0.2, %v3289_v42 }
 0x247   : > { %2833 = vst [vmem:[%s4493_s28 + $0x140] sm:$0xff] %v2769_v61 }
 0x248   : > { %v2770_v47 = vsel %vm2642_vm10, %v3289_v42, %v2706_v46 }
 0x249   : > { %v2225_v41 = vpop.f32.mrb[84].mxu1  ;;  %2834 = vst [vmem:[%s4493_s28 + $0x148] sm:$0xff] %v2770_v47  ;;  %v2514_v49 = vpop.f32.mrb[84].mxu0 }
 0x24a   : > { %v2227_v40 = vpop.f32.mrb[85].mxu1  ;;  %v3290_v50 = vadd.f32 %v2514_v49, %v2225_v41  ;;  %v2516_v0 = vpop.f32.mrb[85].mxu0 }
 0x24b   : > { %v2228_v44 = vpop.f32.mrb[86].mxu1  ;;  %v2517_v52 = vpop.f32.mrb[86].mxu0 }
 0x24c   : > { %v2230_v54 = vpop.f32.mrb[87].mxu1  ;;  %vm2643_vm11 = vcmp.ge.f32.partialorder %v3290_v50, 0.0  ;;  %v2707_v57 = vmul.f32 0.2, %v3290_v50  ;;  %v3291_v58 = vadd.f32 %v2517_v52, %v2228_v44  ;;  %v2519_v59 = vpop.f32.mrb[87].mxu0 }
 0x24e   : > { %v2771_v51 = vsel %vm2643_vm11, %v3290_v50, %v2707_v57  ;;  %vm2644_vm12 = vcmp.ge.f32.partialorder %v3291_v58, 0.0  ;;  %v2708_v60 = vmul.f32 0.2, %v3291_v58 }
 0x24f   : > { %2835 = vst [vmem:[%s4493_s28 + $0x150] sm:$0xff] %v2771_v51 }
 0x250   : > { %v2772_v63 = vsel %vm2644_vm12, %v3291_v58, %v2708_v60 }
 0x251   : > { %v2233_v6 = vpop.f32.mrb[88].mxu1  ;;  %2836 = vst [vmem:[%s4493_s28 + $0x158] sm:$0xff] %v2772_v63  ;;  %v2522_v55 = vpop.f32.mrb[88].mxu0 }
 0x252   : > { %v2235_v2 = vpop.f32.mrb[89].mxu1  ;;  %v3292_v45 = vadd.f32 %v2522_v55, %v2233_v6  ;;  %v2524_v4 = vpop.f32.mrb[89].mxu0 }
 0x253   : > { %v2236_v9 = vpop.f32.mrb[90].mxu1  ;;  %v2525_v5 = vpop.f32.mrb[90].mxu0 }
 0x254   : > { %v2238_v62 = vpop.f32.mrb[91].mxu1  ;;  %vm2645_vm13 = vcmp.ge.f32.partialorder %v3292_v45, 0.0  ;;  %v2709_v7 = vmul.f32 0.2, %v3292_v45  ;;  %v3293_v8 = vadd.f32 %v2525_v5, %v2236_v9  ;;  %v2527_v48 = vpop.f32.mrb[91].mxu0 }
 0x256   : > { %v2773_v3 = vsel %vm2645_vm13, %v3292_v45, %v2709_v7  ;;  %vm2646_vm14 = vcmp.ge.f32.partialorder %v3293_v8, 0.0  ;;  %v2710_v11 = vmul.f32 0.2, %v3293_v8 }
 0x257   : > { %2837 = vst [vmem:[%s4493_s28 + $0x160] sm:$0xff] %v2773_v3 }
 0x258   : > { %v2774_v14 = vsel %vm2646_vm14, %v3293_v8, %v2710_v11 }
 0x259   : > { %v2241_v12 = vpop.f32.mrb[92].mxu1  ;;  %2838 = vst [vmem:[%s4493_s28 + $0x168] sm:$0xff] %v2774_v14  ;;  %v2530_v15 = vpop.f32.mrb[92].mxu0 }
 0x25a   : > { %v2243_v16 = vpop.f32.mrb[93].mxu1  ;;  %v3294_v10 = vadd.f32 %v2530_v15, %v2241_v12  ;;  %v2532_v17 = vpop.f32.mrb[93].mxu0 }
 0x25b   : > { %v2244_v18 = vpop.f32.mrb[94].mxu1  ;;  %v2533_v29 = vpop.f32.mrb[94].mxu0 }
 0x25c   : > { %v2246_v13 = vpop.f32.mrb[95].mxu1  ;;  %vm2647_vm15 = vcmp.ge.f32.partialorder %v3294_v10, 0.0  ;;  %v2711_v32 = vmul.f32 0.2, %v3294_v10  ;;  %v3295_v19 = vadd.f32 %v2533_v29, %v2244_v18  ;;  %v2535_v21 = vpop.f32.mrb[95].mxu0 }
 0x25e   : > { %v2775_v22 = vsel %vm2647_vm15, %v3294_v10, %v2711_v32  ;;  %vm2648_vm0 = vcmp.ge.f32.partialorder %v3295_v19, 0.0  ;;  %v2712_v53 = vmul.f32 0.2, %v3295_v19 }
 0x25f   : > { %2839 = vst [vmem:[%s4493_s28 + $0x170] sm:$0xff] %v2775_v22 }
 0x260   : > { %v2776_v20 = vsel %vm2648_vm0, %v3295_v19, %v2712_v53 }
 0x261   : > { %v2249_v23 = vpop.f32.mrb[96].mxu1  ;;  %2840 = vst [vmem:[%s4493_s28 + $0x178] sm:$0xff] %v2776_v20  ;;  %v2538_v1 = vpop.f32.mrb[96].mxu0 }
 0x262   : > { %v2251_v25 = vpop.f32.mrb[97].mxu1  ;;  %v3296_v24 = vadd.f32 %v2538_v1, %v2249_v23  ;;  %v2540_v26 = vpop.f32.mrb[97].mxu0 }
 0x263   : > { %v2252_v56 = vpop.f32.mrb[98].mxu1  ;;  %v2541_v27 = vpop.f32.mrb[98].mxu0 }
 0x264   : > { %v2254_v28 = vpop.f32.mrb[99].mxu1  ;;  %vm2649_vm1 = vcmp.ge.f32.partialorder %v3296_v24, 0.0  ;;  %v2713_v33 = vmul.f32 0.2, %v3296_v24  ;;  %v3297_v31 = vadd.f32 %v2541_v27, %v2252_v56  ;;  %v2543_v30 = vpop.f32.mrb[99].mxu0 }
 0x266   : > { %v2777_v35 = vsel %vm2649_vm1, %v3296_v24, %v2713_v33  ;;  %vm2650_vm2 = vcmp.ge.f32.partialorder %v3297_v31, 0.0  ;;  %v2714_v38 = vmul.f32 0.2, %v3297_v31 }
 0x267   : > { %2841 = vst [vmem:[%s4493_s28 + $0x180] sm:$0xff] %v2777_v35 }
 0x268   : > { %v2778_v36 = vsel %vm2650_vm2, %v3297_v31, %v2714_v38 }
 0x269   : > { %v2257_v39 = vpop.f32.mrb[100].mxu1  ;;  %2842 = vst [vmem:[%s4493_s28 + $0x188] sm:$0xff] %v2778_v36  ;;  %v2546_v34 = vpop.f32.mrb[100].mxu0 }
 0x26a   : > { %v2259_v37 = vpop.f32.mrb[101].mxu1  ;;  %v3298_v42 = vadd.f32 %v2546_v34, %v2257_v39  ;;  %v2548_v43 = vpop.f32.mrb[101].mxu0 }
 0x26b   : > { %v2260_v61 = vpop.f32.mrb[102].mxu1  ;;  %v2549_v46 = vpop.f32.mrb[102].mxu0 }
 0x26c   : > { %v2262_v47 = vpop.f32.mrb[103].mxu1  ;;  %vm2651_vm3 = vcmp.ge.f32.partialorder %v3298_v42, 0.0  ;;  %v2715_v41 = vmul.f32 0.2, %v3298_v42  ;;  %v3299_v49 = vadd.f32 %v2549_v46, %v2260_v61  ;;  %v2551_v40 = vpop.f32.mrb[103].mxu0 }
 0x26e   : > { %v2779_v50 = vsel %vm2651_vm3, %v3298_v42, %v2715_v41  ;;  %vm2652_vm4 = vcmp.ge.f32.partialorder %v3299_v49, 0.0  ;;  %v2716_v0 = vmul.f32 0.2, %v3299_v49 }
 0x26f   : > { %2843 = vst [vmem:[%s4493_s28 + $0x190] sm:$0xff] %v2779_v50 }
 0x270   : > { %v2780_v44 = vsel %vm2652_vm4, %v3299_v49, %v2716_v0 }
 0x271   : > { %v2265_v52 = vpop.f32.mrb[104].mxu1  ;;  %2844 = vst [vmem:[%s4493_s28 + $0x198] sm:$0xff] %v2780_v44  ;;  %v2554_v54 = vpop.f32.mrb[104].mxu0 }
 0x272   : > { %v2267_v57 = vpop.f32.mrb[105].mxu1  ;;  %v3300_v58 = vadd.f32 %v2554_v54, %v2265_v52  ;;  %v2556_v59 = vpop.f32.mrb[105].mxu0 }
 0x273   : > { %v2268_v51 = vpop.f32.mrb[106].mxu1  ;;  %v2557_v60 = vpop.f32.mrb[106].mxu0 }
 0x274   : > { %v2270_v63 = vpop.f32.mrb[107].mxu1  ;;  %vm2653_vm5 = vcmp.ge.f32.partialorder %v3300_v58, 0.0  ;;  %v2717_v6 = vmul.f32 0.2, %v3300_v58  ;;  %v3301_v55 = vadd.f32 %v2557_v60, %v2268_v51  ;;  %v2559_v2 = vpop.f32.mrb[107].mxu0 }
 0x276   : > { %v2781_v45 = vsel %vm2653_vm5, %v3300_v58, %v2717_v6  ;;  %vm2654_vm6 = vcmp.ge.f32.partialorder %v3301_v55, 0.0  ;;  %v2718_v4 = vmul.f32 0.2, %v3301_v55 }
 0x277   : > { %2845 = vst [vmem:[%s4493_s28 + $0x1a0] sm:$0xff] %v2781_v45 }
 0x278   : > { %v2782_v9 = vsel %vm2654_vm6, %v3301_v55, %v2718_v4 }
 0x279   : > { %v2273_v5 = vpop.f32.mrb[108].mxu1  ;;  %2846 = vst [vmem:[%s4493_s28 + $0x1a8] sm:$0xff] %v2782_v9  ;;  %v2562_v62 = vpop.f32.mrb[108].mxu0 }
 0x27a   : > { %v2275_v7 = vpop.f32.mrb[109].mxu1  ;;  %v3302_v8 = vadd.f32 %v2562_v62, %v2273_v5  ;;  %v2564_v48 = vpop.f32.mrb[109].mxu0 }
 0x27b   : > { %v2276_v3 = vpop.f32.mrb[110].mxu1  ;;  %v2565_v11 = vpop.f32.mrb[110].mxu0 }
 0x27c   : > { %v2278_v14 = vpop.f32.mrb[111].mxu1  ;;  %vm2655_vm7 = vcmp.ge.f32.partialorder %v3302_v8, 0.0  ;;  %v2719_v12 = vmul.f32 0.2, %v3302_v8  ;;  %v3303_v15 = vadd.f32 %v2565_v11, %v2276_v3  ;;  %v2567_v16 = vpop.f32.mrb[111].mxu0 }
 0x27e   : > { %v2783_v10 = vsel %vm2655_vm7, %v3302_v8, %v2719_v12  ;;  %vm2656_vm8 = vcmp.ge.f32.partialorder %v3303_v15, 0.0  ;;  %v2720_v17 = vmul.f32 0.2, %v3303_v15 }
 0x27f   : > { %2847 = vst [vmem:[%s4493_s28 + $0x1b0] sm:$0xff] %v2783_v10 }
 0x280   : > { %v2784_v18 = vsel %vm2656_vm8, %v3303_v15, %v2720_v17 }
 0x281   : > { %v2281_v29 = vpop.f32.mrb[112].mxu1  ;;  %2848 = vst [vmem:[%s4493_s28 + $0x1b8] sm:$0xff] %v2784_v18  ;;  %v2570_v13 = vpop.f32.mrb[112].mxu0 }
 0x282   : > { %v2283_v32 = vpop.f32.mrb[113].mxu1  ;;  %v3304_v19 = vadd.f32 %v2570_v13, %v2281_v29  ;;  %v2572_v21 = vpop.f32.mrb[113].mxu0 }
 0x283   : > { %v2284_v22 = vpop.f32.mrb[114].mxu1  ;;  %v2573_v53 = vpop.f32.mrb[114].mxu0 }
 0x284   : > { %v2286_v20 = vpop.f32.mrb[115].mxu1  ;;  %vm2657_vm9 = vcmp.ge.f32.partialorder %v3304_v19, 0.0  ;;  %v2721_v23 = vmul.f32 0.2, %v3304_v19  ;;  %v3305_v1 = vadd.f32 %v2573_v53, %v2284_v22  ;;  %v2575_v25 = vpop.f32.mrb[115].mxu0 }
 0x286   : > { %v2785_v24 = vsel %vm2657_vm9, %v3304_v19, %v2721_v23  ;;  %vm2658_vm10 = vcmp.ge.f32.partialorder %v3305_v1, 0.0  ;;  %v2722_v26 = vmul.f32 0.2, %v3305_v1 }
 0x287   : > { %2849 = vst [vmem:[%s4493_s28 + $0x1c0] sm:$0xff] %v2785_v24 }
 0x288   : > { %v2786_v56 = vsel %vm2658_vm10, %v3305_v1, %v2722_v26 }
 0x289   : > { %v2289_v27 = vpop.f32.mrb[116].mxu1  ;;  %2850 = vst [vmem:[%s4493_s28 + $0x1c8] sm:$0xff] %v2786_v56  ;;  %v2578_v28 = vpop.f32.mrb[116].mxu0 }
 0x28a   : > { %v2291_v33 = vpop.f32.mrb[117].mxu1  ;;  %v3306_v31 = vadd.f32 %v2578_v28, %v2289_v27  ;;  %v2580_v30 = vpop.f32.mrb[117].mxu0 }
 0x28b   : > { %v2292_v35 = vpop.f32.mrb[118].mxu1  ;;  %v2581_v38 = vpop.f32.mrb[118].mxu0 }
 0x28c   : > { %v2294_v36 = vpop.f32.mrb[119].mxu1  ;;  %vm2659_vm11 = vcmp.ge.f32.partialorder %v3306_v31, 0.0  ;;  %v2723_v39 = vmul.f32 0.2, %v3306_v31  ;;  %v3307_v34 = vadd.f32 %v2581_v38, %v2292_v35  ;;  %v2583_v37 = vpop.f32.mrb[119].mxu0 }
 0x28e   : > { %v2787_v42 = vsel %vm2659_vm11, %v3306_v31, %v2723_v39  ;;  %vm2660_vm12 = vcmp.ge.f32.partialorder %v3307_v34, 0.0  ;;  %v2724_v43 = vmul.f32 0.2, %v3307_v34 }
 0x28f   : > { %2851 = vst [vmem:[%s4493_s28 + $0x1d0] sm:$0xff] %v2787_v42 }
 0x290   : > { %v2788_v61 = vsel %vm2660_vm12, %v3307_v34, %v2724_v43 }
 0x291   : > { %v2297_v46 = vpop.f32.mrb[120].mxu1  ;;  %2852 = vst [vmem:[%s4493_s28 + $0x1d8] sm:$0xff] %v2788_v61  ;;  %v2586_v47 = vpop.f32.mrb[120].mxu0 }
 0x292   : > { %v2299_v41 = vpop.f32.mrb[121].mxu1  ;;  %v3308_v49 = vadd.f32 %v2586_v47, %v2297_v46  ;;  %v2588_v40 = vpop.f32.mrb[121].mxu0 }
 0x293   : > { %v2300_v50 = vpop.f32.mrb[122].mxu1  ;;  %v2589_v0 = vpop.f32.mrb[122].mxu0 }
 0x294   : > { %v2302_v44 = vpop.f32.mrb[123].mxu1  ;;  %vm2661_vm13 = vcmp.ge.f32.partialorder %v3308_v49, 0.0  ;;  %v2725_v52 = vmul.f32 0.2, %v3308_v49  ;;  %v3309_v54 = vadd.f32 %v2589_v0, %v2300_v50  ;;  %v2591_v57 = vpop.f32.mrb[123].mxu0 }
 0x296   : > { %v2789_v58 = vsel %vm2661_vm13, %v3308_v49, %v2725_v52  ;;  %vm2662_vm14 = vcmp.ge.f32.partialorder %v3309_v54, 0.0  ;;  %v2726_v59 = vmul.f32 0.2, %v3309_v54 }
 0x297   : > { %2853 = vst [vmem:[%s4493_s28 + $0x1e0] sm:$0xff] %v2789_v58 }
 0x298   : > { %v2790_v51 = vsel %vm2662_vm14, %v3309_v54, %v2726_v59 }
 0x299   : > { %v2305_v60 = vpop.f32.mrb[124].mxu1  ;;  %2854 = vst [vmem:[%s4493_s28 + $0x1e8] sm:$0xff] %v2790_v51  ;;  %v2594_v63 = vpop.f32.mrb[124].mxu0 }
 0x29a   : > { %v2307_v6 = vpop.f32.mrb[125].mxu1  ;;  %v3310_v55 = vadd.f32 %v2594_v63, %v2305_v60  ;;  %v2596_v2 = vpop.f32.mrb[125].mxu0 }
 0x29b   : > { %v2308_v45 = vpop.f32.mrb[126].mxu1  ;;  %v2597_v4 = vpop.f32.mrb[126].mxu0 }
 0x29c   : > { %v2310_v9 = vpop.f32.mrb[127].mxu1  ;;  %vm2663_vm15 = vcmp.ge.f32.partialorder %v3310_v55, 0.0  ;;  %v2727_v5 = vmul.f32 0.2, %v3310_v55  ;;  %v3311_v62 = vadd.f32 %v2597_v4, %v2308_v45  ;;  %v2599_v7 = vpop.f32.mrb[127].mxu0 }
 0x29e   : > { %v2791_v8 = vsel %vm2663_vm15, %v3310_v55, %v2727_v5  ;;  %vm2664_vm0 = vcmp.ge.f32.partialorder %v3311_v62, 0.0  ;;  %v2728_v48 = vmul.f32 0.2, %v3311_v62 }
 0x29f   : > { %2855 = vst [vmem:[%s4493_s28 + $0x1f0] sm:$0xff] %v2791_v8 }
 0x2a0   : > { %v2792_v3 = vsel %vm2664_vm0, %v3311_v62, %v2728_v48 }
 0x2a1   : > { %2856 = vst [vmem:[%s4493_s28 + $0x1f8] sm:$0xff] %v2792_v3 }
 0x2a2   : > { %3830 = shalt.err (!%p3827_p3)
}
 0x2a3   : > { %s3831_s14 = scalar_lea.hbm %s4610_s4, 8192  ;;  %s3835_s22 = scalar_lea.hbm %s4661_s2, 32768 }
 0x2a4   : > { %p3832_p4 = scmp.ne.s32.totalorder %s4610_s4, %s3831_s14  ;;  %p3836_p9 = scmp.lt.u32.totalorder %s4610_s4, %s4661_s2 }
 0x2a5   : > { %p3837_p10 = scmp.lt.u32.totalorder %s3835_s22, %s3831_s14  ;;  %p3839_p12 = scmp.lt.u32.totalorder %s3831_s14, %s4610_s4 }
 0x2a6   : > { %p3833_p7 = pnand %p3832_p4, %p3938_p5 }
 0x2a7   : > { %p3838_p11 = por %p3837_p10, %p3836_p9 }
 0x2a8   : > { %p3834_p8 = pneg %p3833_p7 }
 0x2a9   : > { %p3840_p13 = por %p3839_p12, %p3838_p11 }
 0x2ab   : > { %p3841_p0 = pnand %p3840_p13, %p3834_p8 }
 0x2ad   : > { %3844 = shalt.err (!%p3841_p0)
}
 0x2ae   : > { %s3883_s25 = smov 128   ;;  %s3884_s26 = smov 8  }
 0x2af   : > { %3441 = dma.vmem_to_hbm [thread:$0]  (%p3938_p5), %s4612_s29, 8192, %s4610_s4, %s4618_s13, %s3883_s25, %s3883_s25, %s3884_s26  }
 0x2b0 PF: > { %p3447_p1 = scmp.ge.s32.totalorder %s3879_s12, 2  ;;  %s2886_s27 = sand.u32 1, %s3867_s9  }
 0x2b1   : > { %s2887_s28 = scalar_lea.sflag [#allocation3], %s2886_s27 }
 0x2b2   : > { %p3444_p2 = pnand %p3447_p1, %p3942_p6 }
 0x2b4   : > { %3862 = dma.done.wait (!%p3444_p2), %s2887_s28, 8192  }
 0x2b5   : > { %3864 = vsyncadd (!%p3444_p2), %s2887_s28, 4294959104  ;;  %p12_p3 = scmp.ge.s32.totalorder %s3925_s15, 6   ;;  %s4664_s9 = smov %s3871_s10 }
 0x2b6   : > { %s4665_s10 = smov %s3875_s11  ;;  %s4666_s11 = smov %s3936_s18 }
 0x2b7   : > { %s4667_s12 = smov %s3925_s15  ;;  %14 = sbr.rel (!%p12_p3) target bundleno = 3 (0x3), region = 63 }
 0x2be   :  { %2892 = vsyncpa [#allocation3], 1 }
 0x2bf   :  { %2894 = vsyncpa [#allocation3 + $0x1], 1 }

</bundles_post_ra>
